<compile_context>
chip_gen: v7x
topology: tpu7x:2x2x1
jax: 0.10.0
libtpu: 0.0.40
codegen_flags: <defaults>
</compile_context>

<pallas_src>
import jax
import jax.numpy as jnp
import numpy as np
from jax.experimental import pallas as pl
from jax.experimental.pallas import tpu as pltpu

# ----------------------------- configuration --------------------------------
CFG = dict(
    player_num=16,
    type_num=10,
    player_dim=16,
    type_dim=32,      # must equal hidden_size (positional-encoding broadcast)
    location_dim=32,  # must equal hidden_size (coordination_transform input)
    hidden_size=32,
    encode_length=8,
    max_length=16,
)
PAD = 0
N_HEADS = 2
D_K = CFG["hidden_size"]
D_V = CFG["hidden_size"]
D_MODEL = CFG["hidden_size"]
D_INNER = CFG["hidden_size"] * 2
TP_DIM = CFG["type_dim"] + CFG["player_dim"]    # type_player input width (48)
N_AREA = 10                                     # area_decoder: Linear(hidden, 10, bias=False)
N_OUT = N_AREA + CFG["type_num"]                # area | shot logits fused along lanes (20)
OUT_LANES = 128                                 # lane-dense store; sliced in wrapper
LN_EPS = 1e-6
NEG_INF = -1e9

assert CFG["location_dim"] == D_MODEL and CFG["type_dim"] == D_MODEL

# ---- bf16 weight slab layout: matrices row-stacked, padded to W_LANES lanes ----
W_LANES = 192
R_WA, R_WB, R_WT = 0, 32, 64                    # collapsed front-end weights
R_QKV, R_SAFC = 112, 144                        # self-attn fused QKV / stacked fc
R_EAQ, R_EAKV, R_EAFC = 208, 240, 272           # cross-attn fused Q / KV / fc
R_W1, R_W2, R_HEADS = 336, 368, 432             # FFN + fused [area|shot] heads
W_SLAB_ROWS = 464

# ---- small f32 slab: per-row vectors (width 64) --------------------------------
S_LANES = 64
(SR_WC0, SR_WC1, SR_BC,
 SR_LN_SA_G, SR_LN_SA_B, SR_LN_EA_G, SR_LN_EA_B,
 SR_LN_FFN_G, SR_LN_FFN_B, SR_B1, SR_B2) = range(11)
S_SLAB_ROWS = 11

# ---- token slab lane layout: coords | tp_in | front_bias | mask_bias -----------
C_COORD = 0                # 4 lanes  [ax, ay, bx, by]
C_TP = 4                   # TP_DIM lanes
C_FB = C_TP + TP_DIM       # D_MODEL lanes (collapsed front-end bias)
C_MB = C_FB + D_MODEL      # S lanes (additive attention-mask bias)


# ------------------------------- Pallas kernel -------------------------------
def _predictor_kernel(tok_ref, enc_ref, w_ref, s_ref, out_ref):
    f32, bf16 = jnp.float32, jnp.bfloat16

    BT, S_ENC, D = enc_ref.shape
    NT = tok_ref.shape[0]
    S = NT // BT

    def dot(a, b):                       # bf16 MXU inputs, f32 accumulation
        return jnp.dot(a.astype(bf16), b, preferred_element_type=f32)

    def w(r0, rows, cols=W_LANES):       # static slice of the bf16 weight slab
        return w_ref[r0:r0 + rows, :cols]

    def srow(i, cols=D_MODEL):           # (1, cols) f32 vector row
        return s_ref[i:i + 1, :cols]

    def layer_norm(v, gi, bi):
        mu = jnp.mean(v, axis=-1, keepdims=True)
        var = jnp.mean((v - mu) ** 2, axis=-1, keepdims=True)
        return (v - mu) * jax.lax.rsqrt(var + LN_EPS) * srow(gi) + srow(bi)

    def softmax(scores):                 # exact division (kernel is latency-bound)
        scores = scores - jnp.max(scores, axis=-1, keepdims=True)
        e = jnp.exp(scores)
        return e / jnp.sum(e, axis=-1, keepdims=True)

    tok = tok_ref[...]
    coords = tok[:, C_COORD:C_COORD + 4]
    tp_in = tok[:, C_TP:C_TP + TP_DIM]
    fbias = tok[:, C_FB:C_FB + D_MODEL]
    mask_add = tok[:, C_MB:C_MB + S].reshape(BT, S, S)     # 0 keep / -1e9 drop

    # --- self_coordination_transform + ReLU (VPU outer product, no K=2 matmul) ---
    wc0, wc1, bc = srow(SR_WC0), srow(SR_WC1), srow(SR_BC)
    a_loc = jnp.maximum(coords[:, 0:1] * wc0 + coords[:, 1:2] * wc1 + bc, 0.0)
    b_loc = jnp.maximum(coords[:, 2:3] * wc0 + coords[:, 3:4] * wc1 + bc, 0.0)

    # --- collapsed front end: x = a_loc@W_A' + b_loc@W_B' + tp_in@W_T' + bias ---
    x = (dot(a_loc, w(R_WA, D_MODEL, D_MODEL))
         + dot(b_loc, w(R_WB, D_MODEL, D_MODEL))
         + dot(tp_in, w(R_WT, TP_DIM, D_MODEL))
         + fbias)

    # --- masked multi-head self-attention + residual + LN ------------------------
    # One lane-fused projection: [Q0|Q1|K0|K1|V0|V1]; 1/sqrt(d_k) folded into Q.
    qkv = dot(x, w(R_QKV, D_MODEL, 3 * N_HEADS * D_K))
    heads = []
    for h in range(N_HEADS):             # static unroll, H = 2
        qh = qkv[:, h * D_K:(h + 1) * D_K].reshape(BT, S, D_K)
        kh = qkv[:, (N_HEADS + h) * D_K:(N_HEADS + h + 1) * D_K].reshape(BT, S, D_K)
        vh = qkv[:, (2 * N_HEADS + h) * D_V:(2 * N_HEADS + h + 1) * D_V].reshape(BT, S, D_V)
        sc = jnp.einsum("bqd,bkd->bqk", qh.astype(bf16), kh.astype(bf16),
                        preferred_element_type=f32) + mask_add
        p = softmax(sc)
        heads.append(jnp.einsum("bqk,bkd->bqd", p.astype(bf16), vh.astype(bf16),
                                preferred_element_type=f32).reshape(NT, D_V))
    ctx = jnp.concatenate(heads, axis=-1)                  # (NT, H*D_V)
    x1 = layer_norm(dot(ctx, w(R_SAFC, N_HEADS * D_V, D_MODEL)) + x,
                    SR_LN_SA_G, SR_LN_SA_B)

    # --- encoder-decoder cross-attention (unmasked) + residual + LN ---------------
    enc = enc_ref[...].reshape(BT * S_ENC, D)
    q_all = dot(x1, w(R_EAQ, D_MODEL, N_HEADS * D_K))          # [Q0|Q1], scale folded
    kv_all = dot(enc, w(R_EAKV, D_MODEL, 2 * N_HEADS * D_K))   # [K0|K1|V0|V1]
    heads = []
    for h in range(N_HEADS):
        qh = q_all[:, h * D_K:(h + 1) * D_K].reshape(BT, S, D_K)
        kh = kv_all[:, h * D_K:(h + 1) * D_K].reshape(BT, S_ENC, D_K)
        vh = kv_all[:, (N_HEADS + h) * D_V:(N_HEADS + h + 1) * D_V].reshape(BT, S_ENC, D_V)
        sc = jnp.einsum("bqd,bkd->bqk", qh.astype(bf16), kh.astype(bf16),
                        preferred_element_type=f32)
        p = softmax(sc)
        heads.append(jnp.einsum("bqk,bkd->bqd", p.astype(bf16), vh.astype(bf16),
                                preferred_element_type=f32).reshape(NT, D_V))
    ctx = jnp.concatenate(heads, axis=-1)
    x2 = layer_norm(dot(ctx, w(R_EAFC, N_HEADS * D_V, D_MODEL)) + x1,
                    SR_LN_EA_G, SR_LN_EA_B)

    # --- position-wise feed-forward + residual + LN --------------------------------
    h1 = jnp.maximum(dot(x2, w(R_W1, D_MODEL, D_INNER)) + srow(SR_B1, D_INNER), 0.0)
    dec = layer_norm(dot(h1, w(R_W2, D_INNER, D_MODEL)) + srow(SR_B2) + x2,
                     SR_LN_FFN_G, SR_LN_FFN_B)

    # --- fused, lane-dense prediction heads (padded to 128 lanes) ------------------
    out_ref[...] = dot(dec, w(R_HEADS, D_MODEL, OUT_LANES)).astype(out_ref.dtype)


# ------------------------------ parameter init --------------------------------
def init_params(key):
    cfg = CFG
    pd, td, ld, hd = cfg["player_dim"], cfg["type_dim"], cfg["location_dim"], cfg["hidden_size"]
    ks = iter(jax.random.split(key, 40))

    def w(shape, scale=0.08):
        return scale * jax.random.normal(next(ks), shape, jnp.float32)

    return dict(
        player_emb_table=w((cfg["player_num"], pd), 0.1),
        type_emb_table=w((cfg["type_num"], td), 0.1),
        # self_coordination_transform: Linear(2, location_dim)
        w_coord=w((2, ld)), b_coord=w((ld,)),
        # location_player: Linear(location_dim + player_dim, hidden)  (rows: loc | player)
        w_lp=w((ld + pd, hd)), b_lp=w((hd,)),
        # coordination_transform: Linear(2*location_dim, location_dim)  (rows: A | B)
        w_ct=w((2 * ld, ld)), b_ct=w((ld,)),
        # type_player: Linear(type_dim + player_dim, hidden)  (rows: type | player)
        w_tp=w((td + pd, hd)), b_tp=w((hd,)),
        # model_input_linear: Linear(location_dim + type_dim, hidden)  (rows: coord | type)
        w_mi=w((ld + td, hd)), b_mi=w((hd,)),
        # decoder self-attention (bias-free MHA) + its LayerNorm
        wq_s=w((D_MODEL, N_HEADS * D_K)), wk_s=w((D_MODEL, N_HEADS * D_K)),
        wv_s=w((D_MODEL, N_HEADS * D_V)), wfc_s=w((N_HEADS * D_V, D_MODEL)),
        ln_sa_g=1.0 + w((D_MODEL,), 0.05), ln_sa_b=w((D_MODEL,), 0.05),
        # decoder-encoder cross-attention + its LayerNorm
        wq_e=w((D_MODEL, N_HEADS * D_K)), wk_e=w((D_MODEL, N_HEADS * D_K)),
        wv_e=w((D_MODEL, N_HEADS * D_V)), wfc_e=w((N_HEADS * D_V, D_MODEL)),
        ln_ea_g=1.0 + w((D_MODEL,), 0.05), ln_ea_b=w((D_MODEL,), 0.05),
        # position-wise FFN + its LayerNorm
        w1=w((D_MODEL, D_INNER)), b1=w((D_INNER,)),
        w2=w((D_INNER, D_MODEL)), b2=w((D_MODEL,)),
        ln_ffn_g=1.0 + w((D_MODEL,), 0.05), ln_ffn_b=w((D_MODEL,), 0.05),
        # predictor heads (bias=False)
        w_area=w((D_MODEL, N_AREA)), w_shot=w((D_MODEL, cfg["type_num"])),
    )


def sinusoid_pos_table(n_position, d_hid):
    pos = np.arange(n_position, dtype=np.float32)[:, None]
    j = np.arange(d_hid)
    angle = pos / np.power(10000.0, (2 * (j // 2)) / d_hid)
    table = np.where(j % 2 == 0, np.sin(angle), np.cos(angle)).astype(np.float32)
    return jnp.asarray(table)  # (n_position, d_hid)


def _subsequent_mask(S):
    idx = jnp.arange(S)
    return (idx[:, None] >= idx[None, :])[None]        # (1, S, S) lower-triangular


# ------------------------------ weight packing --------------------------------
def _pack_slabs(p):
    """bf16 weight slab (row-stacked, 192-lane) + small f32 vector slab."""
    scale = 1.0 / float(np.sqrt(D_K))
    ld = CFG["location_dim"]
    W_lp_loc = p["w_lp"][:ld]
    W_ct_A, W_ct_B = p["w_ct"][:ld], p["w_ct"][ld:]
    W_mi_coord, W_mi_type = p["w_mi"][:ld], p["w_mi"][ld:]

    # collapsed front-end weights (pure algebra, no nonlinearity in between)
    W_A = W_lp_loc @ W_ct_A @ W_mi_coord
    W_B = W_lp_loc @ W_ct_B @ W_mi_coord
    W_T = p["w_tp"] @ W_mi_type

    # lane-fused attention projections; 1/sqrt(d_k) folded into the Q weights
    W_sa_qkv = jnp.concatenate([p["wq_s"] * scale, p["wk_s"], p["wv_s"]], axis=1)
    W_ea_q = p["wq_e"] * scale
    W_ea_kv = jnp.concatenate([p["wk_e"], p["wv_e"]], axis=1)
    # fused [area | shot] heads, zero-padded to a lane-dense 128-wide output
    W_heads = jnp.concatenate([p["w_area"], p["w_shot"]], axis=1)

    mats = [(R_WA, W_A), (R_WB, W_B), (R_WT, W_T), (R_QKV, W_sa_qkv),
            (R_SAFC, p["wfc_s"]), (R_EAQ, W_ea_q), (R_EAKV, W_ea_kv),
            (R_EAFC, p["wfc_e"]), (R_W1, p["w1"]), (R_W2, p["w2"]),
            (R_HEADS, W_heads)]
    blocks, row = [], 0
    for off, m in mats:
        assert off == row, (off, row)
        blocks.append(jnp.pad(m, ((0, 0), (0, W_LANES - m.shape[1]))))
        row += m.shape[0]
    assert row == W_SLAB_ROWS
    w_slab = jnp.concatenate(blocks, axis=0).astype(jnp.bfloat16)

    def row64(v):
        return jnp.pad(v, (0, S_LANES - v.shape[0]))

    s_rows = [p["w_coord"][0], p["w_coord"][1], p["b_coord"],
              p["ln_sa_g"], p["ln_sa_b"], p["ln_ea_g"], p["ln_ea_b"],
              p["ln_ffn_g"], p["ln_ffn_b"], p["b1"], p["b2"]]
    s_slab = jnp.stack([row64(v) for v in s_rows]).astype(jnp.float32)
    assert s_slab.shape == (S_SLAB_ROWS, S_LANES)
    return w_slab, s_slab


# ------------------------------- wrapper call ---------------------------------
def transformer_predictor(params, player, player_A_x, player_A_y, player_B_x,
                          player_B_y, shot_type, encoder_output, two_player,
                          *, block_batch=None):
    p = params
    B, S = player.shape
    S_enc = encoder_output.shape[1]
    # Whole batch in ONE grid step: the ~600-cycle per-step overhead exceeds an
    # 8-token shard's compute, so don't split across v7x's two TensorCores at
    # this size.  (Only pass block_batch < B once B*S reaches a few hundred.)
    if block_batch is None:
        block_batch = B
    assert B % block_batch == 0
    nb = B // block_batch
    BT = block_batch
    N, NT = B * S, BT * S

    f32 = jnp.float32
    ld = CFG["location_dim"]

    # ------------- host-side glue: gathers + algebraic front-end folds -----------
    pemb = jnp.take(p["player_emb_table"], player, axis=0)          # (B, S, pd)
    temb = jnp.take(p["type_emb_table"], shot_type, axis=0)         # (B, S, td)
    two = jnp.take(p["player_emb_table"], two_player, axis=0)       # (B, 2, pd)

    coords = jnp.stack([player_A_x, player_A_y, player_B_x, player_B_y],
                       axis=-1).astype(f32).reshape(N, 4)
    tp_in = jnp.concatenate([temb, pemb], axis=-1).reshape(N, TP_DIM)

    W_lp_pl = p["w_lp"][ld:]
    W_ct_A, W_ct_B = p["w_ct"][:ld], p["w_ct"][ld:]
    W_mi_coord, W_mi_type = p["w_mi"][:ld], p["w_mi"][ld:]

    # per-(batch, position) front-end bias: two-player half of location_player,
    # all folded biases, and the positional table pushed through model_input_linear
    two_A = two[:, 0] @ W_lp_pl + p["b_lp"]                          # (B, d)
    two_B = two[:, 1] @ W_lp_pl + p["b_lp"]
    batch_part = ((two_A @ W_ct_A + two_B @ W_ct_B + p["b_ct"]) @ W_mi_coord
                  + p["b_tp"] @ W_mi_type + p["b_mi"])               # (B, d)
    pos = sinusoid_pos_table(CFG["max_length"], CFG["type_dim"])
    pos = pos[CFG["encode_length"]:CFG["encode_length"] + S]         # decode mode
    pos_part = pos @ (W_mi_coord + W_mi_type)                        # (S, d)
    fbias = (batch_part[:, None, :] + pos_part[None, :, :]).reshape(N, D_MODEL)

    # additive self-attention mask (pad & causal): 0 keep / -1e9 drop
    keep = (shot_type != PAD)[:, None, :] & _subsequent_mask(S)      # (B, S, S)
    mask_add = jnp.where(keep, 0.0, NEG_INF).astype(f32).reshape(N, S)

    tok = jnp.concatenate([coords, tp_in, fbias, mask_add], axis=-1)  # (N, 92)
    enc = encoder_output.astype(f32)
    w_slab, s_slab = _pack_slabs(p)

    # ------------------------------- pallas_call --------------------------------
    out = pl.pallas_call(
        _predictor_kernel,
        out_shape=jax.ShapeDtypeStruct((N, OUT_LANES), f32),
        grid=(nb,),
        in_specs=[
            pl.BlockSpec((NT, tok.shape[1]), lambda i: (i, 0)),       # token slab
            pl.BlockSpec((BT, S_enc, D_MODEL), lambda i: (i, 0, 0)),  # encoder out
            pl.BlockSpec(w_slab.shape, lambda i: (0, 0)),             # bf16 weights
            pl.BlockSpec(s_slab.shape, lambda i: (0, 0)),             # f32 vectors
        ],
        out_specs=pl.BlockSpec((NT, OUT_LANES), lambda i: (i, 0)),
        compiler_params=pltpu.CompilerParams(
            dimension_semantics=("parallel",)),
    )(tok, enc, w_slab, s_slab)

    out = out.reshape(B, S, OUT_LANES)
    return out[..., :N_AREA], out[..., N_AREA:N_OUT]   # (area_logits, shot_logits)


# --------------------------- pure-JAX reference -------------------------------
def reference(params, player, ax, ay, bx, by, shot_type, encoder_output, two_player):
    p = params
    B, S = player.shape
    relu = jax.nn.relu

    pemb = jnp.take(p["player_emb_table"], player, axis=0)
    temb = jnp.take(p["type_emb_table"], shot_type, axis=0)
    two = jnp.take(p["player_emb_table"], two_player, axis=0)

    a_xy = jnp.stack([ax, ay], axis=-1).astype(jnp.float32)
    b_xy = jnp.stack([bx, by], axis=-1).astype(jnp.float32)
    a_loc = relu(a_xy @ p["w_coord"] + p["b_coord"])
    b_loc = relu(b_xy @ p["w_coord"] + p["b_coord"])
    a_cat = jnp.concatenate([a_loc, jnp.repeat(two[:, 0:1, :], S, axis=1)], axis=-1)
    b_cat = jnp.concatenate([b_loc, jnp.repeat(two[:, 1:2, :], S, axis=1)], axis=-1)
    a_hid = a_cat @ p["w_lp"] + p["b_lp"]
    b_hid = b_cat @ p["w_lp"] + p["b_lp"]
    coord = jnp.concatenate([a_hid, b_hid], axis=-1) @ p["w_ct"] + p["b_ct"]
    typ = jnp.concatenate([temb, pemb], axis=-1) @ p["w_tp"] + p["b_tp"]

    pos = sinusoid_pos_table(CFG["max_length"], CFG["type_dim"])
    pos = pos[CFG["encode_length"]:CFG["encode_length"] + S]
    coord = coord + pos
    typ = typ + pos
    x = jnp.concatenate([coord, typ], axis=-1) @ p["w_mi"] + p["b_mi"]

    mask = (shot_type != PAD)[:, None, :] & _subsequent_mask(S)      # (B, S, S)

    def ln(v, g, b):
        mu = jnp.mean(v, axis=-1, keepdims=True)
        var = jnp.mean((v - mu) ** 2, axis=-1, keepdims=True)
        return (v - mu) / jnp.sqrt(var + LN_EPS) * g + b

    def mha(q_in, kv_in, wq, wk, wv, wfc, g, b, attn_mask):
        Bq, Lq, _ = q_in.shape
        Lk = kv_in.shape[1]
        q = (q_in @ wq).reshape(Bq, Lq, N_HEADS, D_K).transpose(0, 2, 1, 3)
        k = (kv_in @ wk).reshape(Bq, Lk, N_HEADS, D_K).transpose(0, 2, 1, 3)
        v = (kv_in @ wv).reshape(Bq, Lk, N_HEADS, D_V).transpose(0, 2, 1, 3)
        scores = (q / jnp.sqrt(jnp.float32(D_K))) @ k.transpose(0, 1, 3, 2)
        if attn_mask is not None:
            scores = jnp.where(attn_mask[:, None], scores, NEG_INF)
        attn = jax.nn.softmax(scores, axis=-1)
        out = (attn @ v).transpose(0, 2, 1, 3).reshape(Bq, Lq, N_HEADS * D_V)
        return ln(out @ wfc + q_in, g, b)

    x1 = mha(x, x, p["wq_s"], p["wk_s"], p["wv_s"], p["wfc_s"],
             p["ln_sa_g"], p["ln_sa_b"], mask)
    x2 = mha(x1, encoder_output.astype(jnp.float32), p["wq_e"], p["wk_e"],
             p["wv_e"], p["wfc_e"], p["ln_ea_g"], p["ln_ea_b"], None)
    dec = ln(relu(x2 @ p["w1"] + p["b1"]) @ p["w2"] + p["b2"] + x2,
             p["ln_ffn_g"], p["ln_ffn_b"])
    return dec @ p["w_area"], dec @ p["w_shot"]


# ------------------------------------ main -------------------------------------
if __name__ == "__main__":
    key = jax.random.PRNGKey(0)
    (k_params, k_player, k_type, k_two,
     k_ax, k_ay, k_bx, k_by, k_enc) = jax.random.split(key, 9)

    B = 2
    S = CFG["encode_length"]          # decode length (encode_length + S <= max_length)
    S_enc = CFG["encode_length"]
    params = init_params(k_params)

    player = jax.random.randint(k_player, (B, S), 0, CFG["player_num"], jnp.int32)
    shot_type = jax.random.randint(k_type, (B, S), 0, CFG["type_num"], jnp.int32)
    two_player = jax.random.randint(k_two, (B, 2), 0, CFG["player_num"], jnp.int32)
    ax = jax.random.uniform(k_ax, (B, S), jnp.float32)
    ay = jax.random.uniform(k_ay, (B, S), jnp.float32)
    bx = jax.random.uniform(k_bx, (B, S), jnp.float32)
    by = jax.random.uniform(k_by, (B, S), jnp.float32)
    encoder_output = 0.5 * jax.random.normal(k_enc, (B, S_enc, D_MODEL), jnp.float32)

    area, shot = transformer_predictor(params, player, ax, ay, bx, by,
                                       shot_type, encoder_output, two_player)
    area, shot = jax.block_until_ready((area, shot))

    ref_area, ref_shot = reference(params, player, ax, ay, bx, by,
                                   shot_type, encoder_output, two_player)
    assert area.shape == (B, S, N_AREA)
    assert shot.shape == (B, S, CFG["type_num"])
    # Tolerance reflects bf16 MXU operands (per the perf review); all LayerNorm /
    # softmax / accumulation math is f32 and the softmax uses exact division.
    np.testing.assert_allclose(np.asarray(area), np.asarray(ref_area),
                               rtol=1e-2, atol=1e-2)
    np.testing.assert_allclose(np.asarray(shot), np.asarray(ref_shot),
                               rtol=1e-2, atol=1e-2)
    print("KERNEL_OK")
</pallas_src>

<mosaic_0001>
module attributes {stable_mosaic.version = 11 : i64} {
  func.func @_predictor_kernel(%arg0: i32, %arg1: memref<16x92xf32, #tpu.memory_space<vmem>>, %arg2: memref<2x8x32xf32, #tpu.memory_space<vmem>>, %arg3: memref<464x192xbf16, #tpu.memory_space<vmem>>, %arg4: memref<11x64xf32, #tpu.memory_space<vmem>>, %arg5: memref<16x128xf32, #tpu.memory_space<vmem>>) attributes {dimension_semantics = [#tpu.dimension_semantics<parallel>], iteration_bounds = array<i64: 1>, scalar_prefetch = 0 : i64, scratch_operands = 0 : i64, tpu.core_type = #tpu.core_type<tc>, window_params = [{transform_indices = @transform_0, window_bounds = array<i64: 16, 92>}, {transform_indices = @transform_1, window_bounds = array<i64: 2, 8, 32>}, {pipeline_mode = #tpu.pipeline_mode<synchronous>, transform_indices = @transform_2, window_bounds = array<i64: 464, 192>}, {pipeline_mode = #tpu.pipeline_mode<synchronous>, transform_indices = @transform_3, window_bounds = array<i64: 11, 64>}, {transform_indices = @transform_4, window_bounds = array<i64: 16, 128>}]} {
    %c0 = arith.constant 0 : index
    %c0_0 = arith.constant 0 : index
    %0 = vector.load %arg1[%c0, %c0_0] : memref<16x92xf32, #tpu.memory_space<vmem>>, vector<16x92xf32>
    %1 = vector.extract_strided_slice %0 {offsets = [0, 0], sizes = [16, 4], strides = [1, 1]} : vector<16x92xf32> to vector<16x4xf32>
    %2 = vector.extract_strided_slice %0 {offsets = [0, 4], sizes = [16, 48], strides = [1, 1]} : vector<16x92xf32> to vector<16x48xf32>
    %3 = vector.extract_strided_slice %0 {offsets = [0, 52], sizes = [16, 32], strides = [1, 1]} : vector<16x92xf32> to vector<16x32xf32>
    %4 = vector.extract_strided_slice %0 {offsets = [0, 84], sizes = [16, 8], strides = [1, 1]} : vector<16x92xf32> to vector<16x8xf32>
    %5 = vector.shape_cast %4 : vector<16x8xf32> to vector<2x8x8xf32>
    %c0_1 = arith.constant 0 : index
    %c0_2 = arith.constant 0 : index
    %6 = vector.load %arg4[%c0_1, %c0_2] : memref<11x64xf32, #tpu.memory_space<vmem>>, vector<1x32xf32>
    %c1 = arith.constant 1 : index
    %c0_3 = arith.constant 0 : index
    %7 = vector.load %arg4[%c1, %c0_3] : memref<11x64xf32, #tpu.memory_space<vmem>>, vector<1x32xf32>
    %c2 = arith.constant 2 : index
    %c0_4 = arith.constant 0 : index
    %8 = vector.load %arg4[%c2, %c0_4] : memref<11x64xf32, #tpu.memory_space<vmem>>, vector<1x32xf32>
    %9 = vector.extract_strided_slice %1 {offsets = [0, 0], sizes = [16, 1], strides = [1, 1]} : vector<16x4xf32> to vector<16x1xf32>
    %10 = vector.broadcast %9 : vector<16x1xf32> to vector<16x32xf32>
    %11 = vector.broadcast %6 : vector<1x32xf32> to vector<16x32xf32>
    %12 = arith.mulf %10, %11 : vector<16x32xf32>
    %13 = vector.extract_strided_slice %1 {offsets = [0, 1], sizes = [16, 1], strides = [1, 1]} : vector<16x4xf32> to vector<16x1xf32>
    %14 = vector.broadcast %13 : vector<16x1xf32> to vector<16x32xf32>
    %15 = vector.broadcast %7 : vector<1x32xf32> to vector<16x32xf32>
    %16 = arith.mulf %14, %15 : vector<16x32xf32>
    %17 = arith.addf %12, %16 : vector<16x32xf32>
    %18 = vector.broadcast %8 : vector<1x32xf32> to vector<16x32xf32>
    %19 = arith.addf %17, %18 : vector<16x32xf32>
    %cst = arith.constant 0.000000e+00 : f32
    %20 = vector.broadcast %cst : f32 to vector<16x32xf32>
    %21 = arith.maximumf %19, %20 : vector<16x32xf32>
    %22 = vector.extract_strided_slice %1 {offsets = [0, 2], sizes = [16, 1], strides = [1, 1]} : vector<16x4xf32> to vector<16x1xf32>
    %23 = vector.broadcast %22 : vector<16x1xf32> to vector<16x32xf32>
    %24 = vector.broadcast %6 : vector<1x32xf32> to vector<16x32xf32>
    %25 = arith.mulf %23, %24 : vector<16x32xf32>
    %26 = vector.extract_strided_slice %1 {offsets = [0, 3], sizes = [16, 1], strides = [1, 1]} : vector<16x4xf32> to vector<16x1xf32>
    %27 = vector.broadcast %26 : vector<16x1xf32> to vector<16x32xf32>
    %28 = vector.broadcast %7 : vector<1x32xf32> to vector<16x32xf32>
    %29 = arith.mulf %27, %28 : vector<16x32xf32>
    %30 = arith.addf %25, %29 : vector<16x32xf32>
    %31 = vector.broadcast %8 : vector<1x32xf32> to vector<16x32xf32>
    %32 = arith.addf %30, %31 : vector<16x32xf32>
    %cst_5 = arith.constant 0.000000e+00 : f32
    %33 = vector.broadcast %cst_5 : f32 to vector<16x32xf32>
    %34 = arith.maximumf %32, %33 : vector<16x32xf32>
    %c0_6 = arith.constant 0 : index
    %c0_7 = arith.constant 0 : index
    %35 = vector.load %arg3[%c0_6, %c0_7] : memref<464x192xbf16, #tpu.memory_space<vmem>>, vector<32x32xbf16>
    %36 = arith.truncf %21 : vector<16x32xf32> to vector<16x32xbf16>
    %cst_8 = arith.constant dense<0.000000e+00> : vector<16x32xf32>
    %37 = tpu.matmul %36, %35, %cst_8 {dimension_numbers = #tpu.dot_dimension_numbers<[1], [0], [0], [1], [0, 0, 1, 1], [], []>} : vector<16x32xbf16>, vector<32x32xbf16>, vector<16x32xf32> -> vector<16x32xf32>
    %c32 = arith.constant 32 : index
    %c0_9 = arith.constant 0 : index
    %38 = vector.load %arg3[%c32, %c0_9] : memref<464x192xbf16, #tpu.memory_space<vmem>>, vector<32x32xbf16>
    %39 = arith.truncf %34 : vector<16x32xf32> to vector<16x32xbf16>
    %cst_10 = arith.constant dense<0.000000e+00> : vector<16x32xf32>
    %40 = tpu.matmul %39, %38, %cst_10 {dimension_numbers = #tpu.dot_dimension_numbers<[1], [0], [0], [1], [0, 0, 1, 1], [], []>} : vector<16x32xbf16>, vector<32x32xbf16>, vector<16x32xf32> -> vector<16x32xf32>
    %41 = arith.addf %37, %40 : vector<16x32xf32>
    %c64 = arith.constant 64 : index
    %c0_11 = arith.constant 0 : index
    %42 = vector.load %arg3[%c64, %c0_11] : memref<464x192xbf16, #tpu.memory_space<vmem>>, vector<48x32xbf16>
    %43 = arith.truncf %2 : vector<16x48xf32> to vector<16x48xbf16>
    %cst_12 = arith.constant dense<0.000000e+00> : vector<16x32xf32>
    %44 = tpu.matmul %43, %42, %cst_12 {dimension_numbers = #tpu.dot_dimension_numbers<[1], [0], [0], [1], [0, 0, 1, 1], [], []>} : vector<16x48xbf16>, vector<48x32xbf16>, vector<16x32xf32> -> vector<16x32xf32>
    %45 = arith.addf %41, %44 : vector<16x32xf32>
    %46 = arith.addf %45, %3 : vector<16x32xf32>
    %c112 = arith.constant 112 : index
    %c0_13 = arith.constant 0 : index
    %47 = vector.load %arg3[%c112, %c0_13] : memref<464x192xbf16, #tpu.memory_space<vmem>>, vector<32x192xbf16>
    %48 = arith.truncf %46 : vector<16x32xf32> to vector<16x32xbf16>
    %cst_14 = arith.constant dense<0.000000e+00> : vector<16x192xf32>
    %49 = tpu.matmul %48, %47, %cst_14 {dimension_numbers = #tpu.dot_dimension_numbers<[1], [0], [0], [1], [0, 0, 1, 1], [], []>} : vector<16x32xbf16>, vector<32x192xbf16>, vector<16x192xf32> -> vector<16x192xf32>
    %50 = vector.extract_strided_slice %49 {offsets = [0, 0], sizes = [16, 32], strides = [1, 1]} : vector<16x192xf32> to vector<16x32xf32>
    %51 = vector.shape_cast %50 : vector<16x32xf32> to vector<2x8x32xf32>
    %52 = vector.extract_strided_slice %49 {offsets = [0, 64], sizes = [16, 32], strides = [1, 1]} : vector<16x192xf32> to vector<16x32xf32>
    %53 = vector.shape_cast %52 : vector<16x32xf32> to vector<2x8x32xf32>
    %54 = vector.extract_strided_slice %49 {offsets = [0, 128], sizes = [16, 32], strides = [1, 1]} : vector<16x192xf32> to vector<16x32xf32>
    %55 = vector.shape_cast %54 : vector<16x32xf32> to vector<2x8x32xf32>
    %56 = arith.truncf %51 : vector<2x8x32xf32> to vector<2x8x32xbf16>
    %57 = arith.truncf %53 : vector<2x8x32xf32> to vector<2x8x32xbf16>
    "tpu.trace_start"() <{level = 10 : i32, message = "bqd,bkd->bqk"}> : () -> ()
    %cst_15 = arith.constant dense<0.000000e+00> : vector<2x8x8xf32>
    %58 = tpu.matmul %56, %57, %cst_15 {dimension_numbers = #tpu.dot_dimension_numbers<[2], [2], [1], [1], [0, 0, 0, 1, 1, 1], [0], [0]>} : vector<2x8x32xbf16>, vector<2x8x32xbf16>, vector<2x8x8xf32> -> vector<2x8x8xf32>
    "tpu.trace_stop"() : () -> ()
    %59 = arith.addf %58, %5 : vector<2x8x8xf32>
    %cst_16 = arith.constant dense<0xFF800000> : vector<2x8xf32>
    %60 = vector.multi_reduction <maximumf>, %59, %cst_16 [2] : vector<2x8x8xf32> to vector<2x8xf32>
    %61 = vector.shape_cast %60 : vector<2x8xf32> to vector<2x8x1xf32>
    %62 = vector.broadcast %61 : vector<2x8x1xf32> to vector<2x8x8xf32>
    %63 = arith.subf %59, %62 : vector<2x8x8xf32>
    %64 = math.exp %63 : vector<2x8x8xf32>
    %cst_17 = arith.constant dense<0.000000e+00> : vector<2x8xf32>
    %65 = vector.multi_reduction <add>, %64, %cst_17 [2] : vector<2x8x8xf32> to vector<2x8xf32>
    %66 = vector.shape_cast %65 : vector<2x8xf32> to vector<2x8x1xf32>
    %67 = vector.broadcast %66 : vector<2x8x1xf32> to vector<2x8x8xf32>
    %68 = arith.divf %64, %67 : vector<2x8x8xf32>
    %69 = arith.truncf %68 : vector<2x8x8xf32> to vector<2x8x8xbf16>
    %70 = arith.truncf %55 : vector<2x8x32xf32> to vector<2x8x32xbf16>
    "tpu.trace_start"() <{level = 10 : i32, message = "bqk,bkd->bqd"}> : () -> ()
    %cst_18 = arith.constant dense<0.000000e+00> : vector<2x8x32xf32>
    %71 = tpu.matmul %69, %70, %cst_18 {dimension_numbers = #tpu.dot_dimension_numbers<[2], [1], [1], [2], [0, 0, 0, 1, 1, 2], [0], [0]>} : vector<2x8x8xbf16>, vector<2x8x32xbf16>, vector<2x8x32xf32> -> vector<2x8x32xf32>
    "tpu.trace_stop"() : () -> ()
    %72 = vector.shape_cast %71 : vector<2x8x32xf32> to vector<16x32xf32>
    %73 = vector.extract_strided_slice %49 {offsets = [0, 32], sizes = [16, 32], strides = [1, 1]} : vector<16x192xf32> to vector<16x32xf32>
    %74 = vector.shape_cast %73 : vector<16x32xf32> to vector<2x8x32xf32>
    %75 = vector.extract_strided_slice %49 {offsets = [0, 96], sizes = [16, 32], strides = [1, 1]} : vector<16x192xf32> to vector<16x32xf32>
    %76 = vector.shape_cast %75 : vector<16x32xf32> to vector<2x8x32xf32>
    %77 = vector.extract_strided_slice %49 {offsets = [0, 160], sizes = [16, 32], strides = [1, 1]} : vector<16x192xf32> to vector<16x32xf32>
    %78 = vector.shape_cast %77 : vector<16x32xf32> to vector<2x8x32xf32>
    %79 = arith.truncf %74 : vector<2x8x32xf32> to vector<2x8x32xbf16>
    %80 = arith.truncf %76 : vector<2x8x32xf32> to vector<2x8x32xbf16>
    "tpu.trace_start"() <{level = 10 : i32, message = "bqd,bkd->bqk"}> : () -> ()
    %cst_19 = arith.constant dense<0.000000e+00> : vector<2x8x8xf32>
    %81 = tpu.matmul %79, %80, %cst_19 {dimension_numbers = #tpu.dot_dimension_numbers<[2], [2], [1], [1], [0, 0, 0, 1, 1, 1], [0], [0]>} : vector<2x8x32xbf16>, vector<2x8x32xbf16>, vector<2x8x8xf32> -> vector<2x8x8xf32>
    "tpu.trace_stop"() : () -> ()
    %82 = arith.addf %81, %5 : vector<2x8x8xf32>
    %cst_20 = arith.constant dense<0xFF800000> : vector<2x8xf32>
    %83 = vector.multi_reduction <maximumf>, %82, %cst_20 [2] : vector<2x8x8xf32> to vector<2x8xf32>
    %84 = vector.shape_cast %83 : vector<2x8xf32> to vector<2x8x1xf32>
    %85 = vector.broadcast %84 : vector<2x8x1xf32> to vector<2x8x8xf32>
    %86 = arith.subf %82, %85 : vector<2x8x8xf32>
    %87 = math.exp %86 : vector<2x8x8xf32>
    %cst_21 = arith.constant dense<0.000000e+00> : vector<2x8xf32>
    %88 = vector.multi_reduction <add>, %87, %cst_21 [2] : vector<2x8x8xf32> to vector<2x8xf32>
    %89 = vector.shape_cast %88 : vector<2x8xf32> to vector<2x8x1xf32>
    %90 = vector.broadcast %89 : vector<2x8x1xf32> to vector<2x8x8xf32>
    %91 = arith.divf %87, %90 : vector<2x8x8xf32>
    %92 = arith.truncf %91 : vector<2x8x8xf32> to vector<2x8x8xbf16>
    %93 = arith.truncf %78 : vector<2x8x32xf32> to vector<2x8x32xbf16>
    "tpu.trace_start"() <{level = 10 : i32, message = "bqk,bkd->bqd"}> : () -> ()
    %cst_22 = arith.constant dense<0.000000e+00> : vector<2x8x32xf32>
    %94 = tpu.matmul %92, %93, %cst_22 {dimension_numbers = #tpu.dot_dimension_numbers<[2], [1], [1], [2], [0, 0, 0, 1, 1, 2], [0], [0]>} : vector<2x8x8xbf16>, vector<2x8x32xbf16>, vector<2x8x32xf32> -> vector<2x8x32xf32>
    "tpu.trace_stop"() : () -> ()
    %95 = vector.shape_cast %94 : vector<2x8x32xf32> to vector<16x32xf32>
    %96 = tpu.concatenate %72, %95 in 1 : vector<16x32xf32>, vector<16x32xf32> -> vector<16x64xf32>
    %c144 = arith.constant 144 : index
    %c0_23 = arith.constant 0 : index
    %97 = vector.load %arg3[%c144, %c0_23] : memref<464x192xbf16, #tpu.memory_space<vmem>>, vector<64x32xbf16>
    %98 = arith.truncf %96 : vector<16x64xf32> to vector<16x64xbf16>
    %cst_24 = arith.constant dense<0.000000e+00> : vector<16x32xf32>
    %99 = tpu.matmul %98, %97, %cst_24 {dimension_numbers = #tpu.dot_dimension_numbers<[1], [0], [0], [1], [0, 0, 1, 1], [], []>} : vector<16x64xbf16>, vector<64x32xbf16>, vector<16x32xf32> -> vector<16x32xf32>
    %100 = arith.addf %99, %46 : vector<16x32xf32>
    %cst_25 = arith.constant dense<0.000000e+00> : vector<16xf32>
    %101 = vector.multi_reduction <add>, %100, %cst_25 [1] : vector<16x32xf32> to vector<16xf32>
    %102 = vector.shape_cast %101 : vector<16xf32> to vector<16x1xf32>
    %cst_26 = arith.constant 3.200000e+01 : f32
    %103 = vector.broadcast %cst_26 : f32 to vector<16x1xf32>
    %104 = arith.divf %102, %103 : vector<16x1xf32>
    %105 = vector.broadcast %104 : vector<16x1xf32> to vector<16x32xf32>
    %106 = arith.subf %100, %105 : vector<16x32xf32>
    %107 = arith.mulf %106, %106 : vector<16x32xf32>
    %cst_27 = arith.constant dense<0.000000e+00> : vector<16xf32>
    %108 = vector.multi_reduction <add>, %107, %cst_27 [1] : vector<16x32xf32> to vector<16xf32>
    %109 = vector.shape_cast %108 : vector<16xf32> to vector<16x1xf32>
    %cst_28 = arith.constant 3.200000e+01 : f32
    %110 = vector.broadcast %cst_28 : f32 to vector<16x1xf32>
    %111 = arith.divf %109, %110 : vector<16x1xf32>
    %112 = vector.broadcast %104 : vector<16x1xf32> to vector<16x32xf32>
    %113 = arith.subf %100, %112 : vector<16x32xf32>
    %cst_29 = arith.constant 9.99999997E-7 : f32
    %114 = vector.broadcast %cst_29 : f32 to vector<16x1xf32>
    %115 = arith.addf %111, %114 : vector<16x1xf32>
    %116 = math.rsqrt %115 : vector<16x1xf32>
    %117 = vector.broadcast %116 : vector<16x1xf32> to vector<16x32xf32>
    %118 = arith.mulf %113, %117 : vector<16x32xf32>
    %c3 = arith.constant 3 : index
    %c0_30 = arith.constant 0 : index
    %119 = vector.load %arg4[%c3, %c0_30] : memref<11x64xf32, #tpu.memory_space<vmem>>, vector<1x32xf32>
    %120 = vector.broadcast %119 : vector<1x32xf32> to vector<16x32xf32>
    %121 = arith.mulf %118, %120 : vector<16x32xf32>
    %c4 = arith.constant 4 : index
    %c0_31 = arith.constant 0 : index
    %122 = vector.load %arg4[%c4, %c0_31] : memref<11x64xf32, #tpu.memory_space<vmem>>, vector<1x32xf32>
    %123 = vector.broadcast %122 : vector<1x32xf32> to vector<16x32xf32>
    %124 = arith.addf %121, %123 : vector<16x32xf32>
    %c0_32 = arith.constant 0 : index
    %c0_33 = arith.constant 0 : index
    %c0_34 = arith.constant 0 : index
    %125 = vector.load %arg2[%c0_32, %c0_33, %c0_34] : memref<2x8x32xf32, #tpu.memory_space<vmem>>, vector<2x8x32xf32>
    %126 = vector.shape_cast %125 : vector<2x8x32xf32> to vector<16x32xf32>
    %c208 = arith.constant 208 : index
    %c0_35 = arith.constant 0 : index
    %127 = vector.load %arg3[%c208, %c0_35] : memref<464x192xbf16, #tpu.memory_space<vmem>>, vector<32x64xbf16>
    %128 = arith.truncf %124 : vector<16x32xf32> to vector<16x32xbf16>
    %cst_36 = arith.constant dense<0.000000e+00> : vector<16x64xf32>
    %129 = tpu.matmul %128, %127, %cst_36 {dimension_numbers = #tpu.dot_dimension_numbers<[1], [0], [0], [1], [0, 0, 1, 1], [], []>} : vector<16x32xbf16>, vector<32x64xbf16>, vector<16x64xf32> -> vector<16x64xf32>
    %c240 = arith.constant 240 : index
    %c0_37 = arith.constant 0 : index
    %130 = vector.load %arg3[%c240, %c0_37] : memref<464x192xbf16, #tpu.memory_space<vmem>>, vector<32x128xbf16>
    %131 = arith.truncf %126 : vector<16x32xf32> to vector<16x32xbf16>
    %cst_38 = arith.constant dense<0.000000e+00> : vector<16x128xf32>
    %132 = tpu.matmul %131, %130, %cst_38 {dimension_numbers = #tpu.dot_dimension_numbers<[1], [0], [0], [1], [0, 0, 1, 1], [], []>} : vector<16x32xbf16>, vector<32x128xbf16>, vector<16x128xf32> -> vector<16x128xf32>
    %133 = vector.extract_strided_slice %129 {offsets = [0, 0], sizes = [16, 32], strides = [1, 1]} : vector<16x64xf32> to vector<16x32xf32>
    %134 = vector.shape_cast %133 : vector<16x32xf32> to vector<2x8x32xf32>
    %135 = vector.extract_strided_slice %132 {offsets = [0, 0], sizes = [16, 32], strides = [1, 1]} : vector<16x128xf32> to vector<16x32xf32>
    %136 = vector.shape_cast %135 : vector<16x32xf32> to vector<2x8x32xf32>
    %137 = vector.extract_strided_slice %132 {offsets = [0, 64], sizes = [16, 32], strides = [1, 1]} : vector<16x128xf32> to vector<16x32xf32>
    %138 = vector.shape_cast %137 : vector<16x32xf32> to vector<2x8x32xf32>
    %139 = arith.truncf %134 : vector<2x8x32xf32> to vector<2x8x32xbf16>
    %140 = arith.truncf %136 : vector<2x8x32xf32> to vector<2x8x32xbf16>
    "tpu.trace_start"() <{level = 10 : i32, message = "bqd,bkd->bqk"}> : () -> ()
    %cst_39 = arith.constant dense<0.000000e+00> : vector<2x8x8xf32>
    %141 = tpu.matmul %139, %140, %cst_39 {dimension_numbers = #tpu.dot_dimension_numbers<[2], [2], [1], [1], [0, 0, 0, 1, 1, 1], [0], [0]>} : vector<2x8x32xbf16>, vector<2x8x32xbf16>, vector<2x8x8xf32> -> vector<2x8x8xf32>
    "tpu.trace_stop"() : () -> ()
    %cst_40 = arith.constant dense<0xFF800000> : vector<2x8xf32>
    %142 = vector.multi_reduction <maximumf>, %141, %cst_40 [2] : vector<2x8x8xf32> to vector<2x8xf32>
    %143 = vector.shape_cast %142 : vector<2x8xf32> to vector<2x8x1xf32>
    %144 = vector.broadcast %143 : vector<2x8x1xf32> to vector<2x8x8xf32>
    %145 = arith.subf %141, %144 : vector<2x8x8xf32>
    %146 = math.exp %145 : vector<2x8x8xf32>
    %cst_41 = arith.constant dense<0.000000e+00> : vector<2x8xf32>
    %147 = vector.multi_reduction <add>, %146, %cst_41 [2] : vector<2x8x8xf32> to vector<2x8xf32>
    %148 = vector.shape_cast %147 : vector<2x8xf32> to vector<2x8x1xf32>
    %149 = vector.broadcast %148 : vector<2x8x1xf32> to vector<2x8x8xf32>
    %150 = arith.divf %146, %149 : vector<2x8x8xf32>
    %151 = arith.truncf %150 : vector<2x8x8xf32> to vector<2x8x8xbf16>
    %152 = arith.truncf %138 : vector<2x8x32xf32> to vector<2x8x32xbf16>
    "tpu.trace_start"() <{level = 10 : i32, message = "bqk,bkd->bqd"}> : () -> ()
    %cst_42 = arith.constant dense<0.000000e+00> : vector<2x8x32xf32>
    %153 = tpu.matmul %151, %152, %cst_42 {dimension_numbers = #tpu.dot_dimension_numbers<[2], [1], [1], [2], [0, 0, 0, 1, 1, 2], [0], [0]>} : vector<2x8x8xbf16>, vector<2x8x32xbf16>, vector<2x8x32xf32> -> vector<2x8x32xf32>
    "tpu.trace_stop"() : () -> ()
    %154 = vector.shape_cast %153 : vector<2x8x32xf32> to vector<16x32xf32>
    %155 = vector.extract_strided_slice %129 {offsets = [0, 32], sizes = [16, 32], strides = [1, 1]} : vector<16x64xf32> to vector<16x32xf32>
    %156 = vector.shape_cast %155 : vector<16x32xf32> to vector<2x8x32xf32>
    %157 = vector.extract_strided_slice %132 {offsets = [0, 32], sizes = [16, 32], strides = [1, 1]} : vector<16x128xf32> to vector<16x32xf32>
    %158 = vector.shape_cast %157 : vector<16x32xf32> to vector<2x8x32xf32>
    %159 = vector.extract_strided_slice %132 {offsets = [0, 96], sizes = [16, 32], strides = [1, 1]} : vector<16x128xf32> to vector<16x32xf32>
    %160 = vector.shape_cast %159 : vector<16x32xf32> to vector<2x8x32xf32>
    %161 = arith.truncf %156 : vector<2x8x32xf32> to vector<2x8x32xbf16>
    %162 = arith.truncf %158 : vector<2x8x32xf32> to vector<2x8x32xbf16>
    "tpu.trace_start"() <{level = 10 : i32, message = "bqd,bkd->bqk"}> : () -> ()
    %cst_43 = arith.constant dense<0.000000e+00> : vector<2x8x8xf32>
    %163 = tpu.matmul %161, %162, %cst_43 {dimension_numbers = #tpu.dot_dimension_numbers<[2], [2], [1], [1], [0, 0, 0, 1, 1, 1], [0], [0]>} : vector<2x8x32xbf16>, vector<2x8x32xbf16>, vector<2x8x8xf32> -> vector<2x8x8xf32>
    "tpu.trace_stop"() : () -> ()
    %cst_44 = arith.constant dense<0xFF800000> : vector<2x8xf32>
    %164 = vector.multi_reduction <maximumf>, %163, %cst_44 [2] : vector<2x8x8xf32> to vector<2x8xf32>
    %165 = vector.shape_cast %164 : vector<2x8xf32> to vector<2x8x1xf32>
    %166 = vector.broadcast %165 : vector<2x8x1xf32> to vector<2x8x8xf32>
    %167 = arith.subf %163, %166 : vector<2x8x8xf32>
    %168 = math.exp %167 : vector<2x8x8xf32>
    %cst_45 = arith.constant dense<0.000000e+00> : vector<2x8xf32>
    %169 = vector.multi_reduction <add>, %168, %cst_45 [2] : vector<2x8x8xf32> to vector<2x8xf32>
    %170 = vector.shape_cast %169 : vector<2x8xf32> to vector<2x8x1xf32>
    %171 = vector.broadcast %170 : vector<2x8x1xf32> to vector<2x8x8xf32>
    %172 = arith.divf %168, %171 : vector<2x8x8xf32>
    %173 = arith.truncf %172 : vector<2x8x8xf32> to vector<2x8x8xbf16>
    %174 = arith.truncf %160 : vector<2x8x32xf32> to vector<2x8x32xbf16>
    "tpu.trace_start"() <{level = 10 : i32, message = "bqk,bkd->bqd"}> : () -> ()
    %cst_46 = arith.constant dense<0.000000e+00> : vector<2x8x32xf32>
    %175 = tpu.matmul %173, %174, %cst_46 {dimension_numbers = #tpu.dot_dimension_numbers<[2], [1], [1], [2], [0, 0, 0, 1, 1, 2], [0], [0]>} : vector<2x8x8xbf16>, vector<2x8x32xbf16>, vector<2x8x32xf32> -> vector<2x8x32xf32>
    "tpu.trace_stop"() : () -> ()
    %176 = vector.shape_cast %175 : vector<2x8x32xf32> to vector<16x32xf32>
    %177 = tpu.concatenate %154, %176 in 1 : vector<16x32xf32>, vector<16x32xf32> -> vector<16x64xf32>
    %c272 = arith.constant 272 : index
    %c0_47 = arith.constant 0 : index
    %178 = vector.load %arg3[%c272, %c0_47] : memref<464x192xbf16, #tpu.memory_space<vmem>>, vector<64x32xbf16>
    %179 = arith.truncf %177 : vector<16x64xf32> to vector<16x64xbf16>
    %cst_48 = arith.constant dense<0.000000e+00> : vector<16x32xf32>
    %180 = tpu.matmul %179, %178, %cst_48 {dimension_numbers = #tpu.dot_dimension_numbers<[1], [0], [0], [1], [0, 0, 1, 1], [], []>} : vector<16x64xbf16>, vector<64x32xbf16>, vector<16x32xf32> -> vector<16x32xf32>
    %181 = arith.addf %180, %124 : vector<16x32xf32>
    %cst_49 = arith.constant dense<0.000000e+00> : vector<16xf32>
    %182 = vector.multi_reduction <add>, %181, %cst_49 [1] : vector<16x32xf32> to vector<16xf32>
    %183 = vector.shape_cast %182 : vector<16xf32> to vector<16x1xf32>
    %cst_50 = arith.constant 3.200000e+01 : f32
    %184 = vector.broadcast %cst_50 : f32 to vector<16x1xf32>
    %185 = arith.divf %183, %184 : vector<16x1xf32>
    %186 = vector.broadcast %185 : vector<16x1xf32> to vector<16x32xf32>
    %187 = arith.subf %181, %186 : vector<16x32xf32>
    %188 = arith.mulf %187, %187 : vector<16x32xf32>
    %cst_51 = arith.constant dense<0.000000e+00> : vector<16xf32>
    %189 = vector.multi_reduction <add>, %188, %cst_51 [1] : vector<16x32xf32> to vector<16xf32>
    %190 = vector.shape_cast %189 : vector<16xf32> to vector<16x1xf32>
    %cst_52 = arith.constant 3.200000e+01 : f32
    %191 = vector.broadcast %cst_52 : f32 to vector<16x1xf32>
    %192 = arith.divf %190, %191 : vector<16x1xf32>
    %193 = vector.broadcast %185 : vector<16x1xf32> to vector<16x32xf32>
    %194 = arith.subf %181, %193 : vector<16x32xf32>
    %cst_53 = arith.constant 9.99999997E-7 : f32
    %195 = vector.broadcast %cst_53 : f32 to vector<16x1xf32>
    %196 = arith.addf %192, %195 : vector<16x1xf32>
    %197 = math.rsqrt %196 : vector<16x1xf32>
    %198 = vector.broadcast %197 : vector<16x1xf32> to vector<16x32xf32>
    %199 = arith.mulf %194, %198 : vector<16x32xf32>
    %c5 = arith.constant 5 : index
    %c0_54 = arith.constant 0 : index
    %200 = vector.load %arg4[%c5, %c0_54] : memref<11x64xf32, #tpu.memory_space<vmem>>, vector<1x32xf32>
    %201 = vector.broadcast %200 : vector<1x32xf32> to vector<16x32xf32>
    %202 = arith.mulf %199, %201 : vector<16x32xf32>
    %c6 = arith.constant 6 : index
    %c0_55 = arith.constant 0 : index
    %203 = vector.load %arg4[%c6, %c0_55] : memref<11x64xf32, #tpu.memory_space<vmem>>, vector<1x32xf32>
    %204 = vector.broadcast %203 : vector<1x32xf32> to vector<16x32xf32>
    %205 = arith.addf %202, %204 : vector<16x32xf32>
    %c336 = arith.constant 336 : index
    %c0_56 = arith.constant 0 : index
    %206 = vector.load %arg3[%c336, %c0_56] : memref<464x192xbf16, #tpu.memory_space<vmem>>, vector<32x64xbf16>
    %207 = arith.truncf %205 : vector<16x32xf32> to vector<16x32xbf16>
    %cst_57 = arith.constant dense<0.000000e+00> : vector<16x64xf32>
    %208 = tpu.matmul %207, %206, %cst_57 {dimension_numbers = #tpu.dot_dimension_numbers<[1], [0], [0], [1], [0, 0, 1, 1], [], []>} : vector<16x32xbf16>, vector<32x64xbf16>, vector<16x64xf32> -> vector<16x64xf32>
    %c9 = arith.constant 9 : index
    %c0_58 = arith.constant 0 : index
    %209 = vector.load %arg4[%c9, %c0_58] : memref<11x64xf32, #tpu.memory_space<vmem>>, vector<1x64xf32>
    %210 = vector.broadcast %209 : vector<1x64xf32> to vector<16x64xf32>
    %211 = arith.addf %208, %210 : vector<16x64xf32>
    %cst_59 = arith.constant 0.000000e+00 : f32
    %212 = vector.broadcast %cst_59 : f32 to vector<16x64xf32>
    %213 = arith.maximumf %211, %212 : vector<16x64xf32>
    %c368 = arith.constant 368 : index
    %c0_60 = arith.constant 0 : index
    %214 = vector.load %arg3[%c368, %c0_60] : memref<464x192xbf16, #tpu.memory_space<vmem>>, vector<64x32xbf16>
    %215 = arith.truncf %213 : vector<16x64xf32> to vector<16x64xbf16>
    %cst_61 = arith.constant dense<0.000000e+00> : vector<16x32xf32>
    %216 = tpu.matmul %215, %214, %cst_61 {dimension_numbers = #tpu.dot_dimension_numbers<[1], [0], [0], [1], [0, 0, 1, 1], [], []>} : vector<16x64xbf16>, vector<64x32xbf16>, vector<16x32xf32> -> vector<16x32xf32>
    %c10 = arith.constant 10 : index
    %c0_62 = arith.constant 0 : index
    %217 = vector.load %arg4[%c10, %c0_62] : memref<11x64xf32, #tpu.memory_space<vmem>>, vector<1x32xf32>
    %218 = vector.broadcast %217 : vector<1x32xf32> to vector<16x32xf32>
    %219 = arith.addf %216, %218 : vector<16x32xf32>
    %220 = arith.addf %219, %205 : vector<16x32xf32>
    %cst_63 = arith.constant dense<0.000000e+00> : vector<16xf32>
    %221 = vector.multi_reduction <add>, %220, %cst_63 [1] : vector<16x32xf32> to vector<16xf32>
    %222 = vector.shape_cast %221 : vector<16xf32> to vector<16x1xf32>
    %cst_64 = arith.constant 3.200000e+01 : f32
    %223 = vector.broadcast %cst_64 : f32 to vector<16x1xf32>
    %224 = arith.divf %222, %223 : vector<16x1xf32>
    %225 = vector.broadcast %224 : vector<16x1xf32> to vector<16x32xf32>
    %226 = arith.subf %220, %225 : vector<16x32xf32>
    %227 = arith.mulf %226, %226 : vector<16x32xf32>
    %cst_65 = arith.constant dense<0.000000e+00> : vector<16xf32>
    %228 = vector.multi_reduction <add>, %227, %cst_65 [1] : vector<16x32xf32> to vector<16xf32>
    %229 = vector.shape_cast %228 : vector<16xf32> to vector<16x1xf32>
    %cst_66 = arith.constant 3.200000e+01 : f32
    %230 = vector.broadcast %cst_66 : f32 to vector<16x1xf32>
    %231 = arith.divf %229, %230 : vector<16x1xf32>
    %232 = vector.broadcast %224 : vector<16x1xf32> to vector<16x32xf32>
    %233 = arith.subf %220, %232 : vector<16x32xf32>
    %cst_67 = arith.constant 9.99999997E-7 : f32
    %234 = vector.broadcast %cst_67 : f32 to vector<16x1xf32>
    %235 = arith.addf %231, %234 : vector<16x1xf32>
    %236 = math.rsqrt %235 : vector<16x1xf32>
    %237 = vector.broadcast %236 : vector<16x1xf32> to vector<16x32xf32>
    %238 = arith.mulf %233, %237 : vector<16x32xf32>
    %c7 = arith.constant 7 : index
    %c0_68 = arith.constant 0 : index
    %239 = vector.load %arg4[%c7, %c0_68] : memref<11x64xf32, #tpu.memory_space<vmem>>, vector<1x32xf32>
    %240 = vector.broadcast %239 : vector<1x32xf32> to vector<16x32xf32>
    %241 = arith.mulf %238, %240 : vector<16x32xf32>
    %c8 = arith.constant 8 : index
    %c0_69 = arith.constant 0 : index
    %242 = vector.load %arg4[%c8, %c0_69] : memref<11x64xf32, #tpu.memory_space<vmem>>, vector<1x32xf32>
    %243 = vector.broadcast %242 : vector<1x32xf32> to vector<16x32xf32>
    %244 = arith.addf %241, %243 : vector<16x32xf32>
    %c432 = arith.constant 432 : index
    %c0_70 = arith.constant 0 : index
    %245 = vector.load %arg3[%c432, %c0_70] : memref<464x192xbf16, #tpu.memory_space<vmem>>, vector<32x128xbf16>
    %246 = arith.truncf %244 : vector<16x32xf32> to vector<16x32xbf16>
    %cst_71 = arith.constant dense<0.000000e+00> : vector<16x128xf32>
    %247 = tpu.matmul %246, %245, %cst_71 {dimension_numbers = #tpu.dot_dimension_numbers<[1], [0], [0], [1], [0, 0, 1, 1], [], []>} : vector<16x32xbf16>, vector<32x128xbf16>, vector<16x128xf32> -> vector<16x128xf32>
    %c0_72 = arith.constant 0 : index
    %c0_73 = arith.constant 0 : index
    %248 = vector.load %arg5[%c0_72, %c0_73] : memref<16x128xf32, #tpu.memory_space<vmem>>, vector<16x128xf32>
    tpu.vector_store %arg5[%c0_72, %c0_73], %247 {strides = array<i32>} : memref<16x128xf32, #tpu.memory_space<vmem>>, vector<16x128xf32>,
    return
  }
  func.func @transform_0(%arg0: i32) -> (i32, i32) {
    %c0_i32 = arith.constant 0 : i32
    %c0_i32_0 = arith.constant 0 : i32
    return %arg0, %c0_i32 : i32, i32
  }
  func.func @transform_1(%arg0: i32) -> (i32, i32, i32) {
    %c0_i32 = arith.constant 0 : i32
    %c0_i32_0 = arith.constant 0 : i32
    %c0_i32_1 = arith.constant 0 : i32
    return %arg0, %c0_i32, %c0_i32_0 : i32, i32, i32
  }
  func.func @transform_2(%arg0: i32) -> (i32, i32) {
    %c0_i32 = arith.constant 0 : i32
    %c0_i32_0 = arith.constant 0 : i32
    %c0_i32_1 = arith.constant 0 : i32
    return %c0_i32, %c0_i32_0 : i32, i32
  }
  func.func @transform_3(%arg0: i32) -> (i32, i32) {
    %c0_i32 = arith.constant 0 : i32
    %c0_i32_0 = arith.constant 0 : i32
    %c0_i32_1 = arith.constant 0 : i32
    return %c0_i32, %c0_i32_0 : i32, i32
  }
  func.func @transform_4(%arg0: i32) -> (i32, i32) {
    %c0_i32 = arith.constant 0 : i32
    %c0_i32_0 = arith.constant 0 : i32
    return %arg0, %c0_i32 : i32, i32
  }
}

</mosaic_0001>

<bundles_post_ra>
// kernel: tpu_custom_call.1
= control target key start
LH: loop header
LB: loop body
LE: loop exit
PB: predicated region body
PF: predicated region fallthrough
CT: control target
= control target key end

     0   :  { %v2367_v1 = vmov 3   ;;  %v2368_v2 = vmov 2   ;;  %v2369_v5 = vmov 0.0   ;;  %v2370_v6 = vmov 0   ;;  %s2373_s24 = smov 124   ;;  %s2833_s0 = inlined_call_operand.vmem [shape: f32[16,92], index: 0, kind: input, shape index: {}]   ;;  %s2834_s1 = inlined_call_operand.vmem [shape: f32[2,8,32], index: 1, kind: input, shape index: {}]   ;;  %s2835_s2 = inlined_call_operand.vmem [shape: bf16[464,192], index: 2, kind: input, shape index: {}]   ;;  %s2836_s3 = inlined_call_operand.vmem [shape: f32[11,64], index: 3, kind: input, shape index: {}]   ;;  %s2837_s4 = inlined_call_operand.hbm [shape: f32[16,128], index: 4, kind: output, shape index: {}]  }
   0x1   :  { %v2410_v0 = vld [vmem:[%s2833_s0] sm:$0xff]  ;;  %2250 = vset.pattern.permute.xlu1 %v2367_v1  ;;  %2249 = vset.pattern.permute.xlu0 %v2368_v2  ;;  %v2417_v3 = vld [vmem:[%s2833_s0 + $0x8] sm:$0xff]  ;;  %v2267_v7 = vld [vmem:[%s2835_s2 + $0x30] ss:$8 sps:$4 sm:$0xff]   ;;  %v2371_v8 = vmov 1   ;;  %vm2372_vm0 = vmmov 0  }
   0x2   :  { %75 = vperm.xlu1 %2250, %v2410_v0   ;;  %65 = vperm.xlu0 %2249, %v2410_v0   ;;  %v2266_v4 = vld [vmem:[%s2835_s2 + $0x20] ss:$8 sps:$4 sm:$0xff]   ;;  %v219_v9 = vpack.c.bf16 %v2417_v3, %v2410_v0  ;;  %v2271_v11 = vld [vmem:[%s2835_s2 + $0x10] ss:$8 sps:$4 sm:$0xff]  }
   0x3   :  { %2044 = vmatprep.subr.bf16.mxu0 %v2369_v5  ;;  %2052 = vmatprep.subr.bf16.mxu1 %v2369_v5  ;;  %v2269_v10 = vld [vmem:[%s2835_s2] ss:$8 sps:$4 sm:$0xff]  }
   0x4   :  { %2045 = vmatpush3.bf16.msra.mxu0 %v2266_v4  ;;  %2048 = vmatprep.mubr.msk.bf16.mxu0 %vm2372_vm0, %v2369_v5 }
   0x5   :  { %2046 = vmatprep.subr.bf16.mxu0 %v2369_v5  ;;  %2056 = vmatprep.mubr.msk.bf16.mxu1 %vm2372_vm0, %v2369_v5 }
   0x6   :  { %79 = vperm.xlu1 %2250, %v2417_v3   ;;  %69 = vperm.xlu0 %2249, %v2417_v3  }
   0x7   :  { %2053 = vmatpush3.bf16.msra.mxu1 %v2269_v10 }
   0x8   :  { %2047 = vmatpush3.bf16.msra.mxu0 %v2267_v7  ;;  %2054 = vmatprep.subr.bf16.mxu1 %v2369_v5 }
   0x9   :  { %2060 = vmatprep.subr.bf16.mxu0 %v2369_v5 }
   0xa   :  { %2252 = vset.pattern.permute.xlu1 %v2370_v6  ;;  %2251 = vset.pattern.permute.xlu0 %v2370_v6 }
   0xb   :  { %31 = vperm.xlu1 %2252, %v2417_v3   ;;  %26 = vperm.xlu0 %2251, %v2410_v0  }
   0xc   :  { %2055 = vmatpush3.bf16.msra.mxu1 %v2271_v11 }
   0xf   :  { %2253 = vset.pattern.permute.xlu1 %v2371_v8  ;;  %2254 = vset.pattern.permute.xlu0 %v2371_v8 }
  0x10   :  { %41 = vperm.xlu1 %2253, %v2410_v0   ;;  %45 = vperm.xlu0 %2254, %v2417_v3  }
  0x14   :  { %221 = vrot.lane.b32.xlu1 %v219_v9, %s2373_s24  ;;  %2265 = vset.pattern.permute.xlu0 %v2367_v1 }
  0x15   :  { %9 = vsyncpa [#allocation3], 0  ;;  %s2374_s27 = smov 76   ;;  %v1907_v12 = vld [vmem:[%s2836_s3 + $0x1] ss:$0 sm:$0xff]  ;;  %vm112_vm1 = vcmask 261120  }
  0x16   :  { %290 = vrot.lane.b32.xlu0 %v2417_v3, %s2374_s27  ;;  %v1906_v13 = vld [vmem:[%s2836_s3] ss:$0 sm:$0xff]  ;;  %v1908_v19 = vld [vmem:[%s2836_s3 + $0x2] ss:$0 sm:$0xff]  ;;  %v2270_v39 = vld [vmem:[%s2835_s2 + $0x50] ss:$8 sps:$4 sm:$0xff]  }
  0x17   :  { %v2268_v31 = vld [vmem:[%s2835_s2 + $0x40] ss:$8 sps:$4 sm:$0xff]   ;;  %vm241_vm2 = vcmask 392192   ;;  %v2275_v49 = vld [vmem:[%s2835_s2 + $0x74] ss:$8 sps:$4 sm:$0xff]   ;;  %s2375_s21 = smov 64  }
  0x18   :  { %288 = vrot.lane.b32.xlu1 %v2410_v0, %s2374_s27  ;;  %v2272_v44 = vld [vmem:[%s2835_s2 + $0x60] ss:$8 sps:$4 sm:$0xff]   ;;  %v2273_v50 = vld [vmem:[%s2835_s2 + $0x70] ss:$8 sps:$4 sm:$0xff]   ;;  %324 = vmatprep.subr.bf16.mxu1 %v2275_v49  ;;  %v2278_v51 = vld [vmem:[%s2835_s2 + $0x84] ss:$8 sps:$4 sm:$0xff]  }
  0x19   :  { %v2276_v52 = vld [vmem:[%s2835_s2 + $0x80] ss:$8 sps:$4 sm:$0xff]   ;;  %s2376_s22 = smov 44   ;;  %vm503_vm3 = vcmask 1043456   ;;  %vm473_vm4 = vcmask 64512   ;;  %s2377_s23 = smov 32  }
  0x1a   :  { %s2378_s24 = smov 96   ;;  %vm858_vm5 = vcmask 523264   ;;  %s2379_s29 = smov [#allocation2]  }
  0x81   :  { %v76_v14 = vpop.permute.xlu1 %75  ;;  %v66_v15 = vpop.permute.xlu0 %65 }
  0x82   :  { %v82_v16 = vmul.f32 %v1907_v12, %v76_v14  ;;  %v72_v17 = vmul.f32 %v1906_v13, %v66_v15 }
  0x84   :  { %v84_v18 = vadd.f32 %v82_v16, %v72_v17 }
  0x85   :  { %v80_v20 = vpop.permute.xlu1 %79  ;;  %v70_v21 = vpop.permute.xlu0 %69 }
  0x86   :  { %v83_v22 = vmul.f32 %v1907_v12, %v80_v20  ;;  %v73_v23 = vmul.f32 %v1906_v13, %v70_v21  ;;  %v86_v24 = vadd.f32 %v1908_v19, %v84_v18 }
  0x88   :  { %v85_v25 = vadd.f32 %v83_v22, %v73_v23  ;;  %v88_v29 = vmax.f32 %v86_v24, 0.0 }
  0x8a   :  { %v87_v26 = vadd.f32 %v1908_v19, %v85_v25  ;;  %v32_v27 = vpop.permute.xlu1 %31  ;;  %v27_v28 = vpop.permute.xlu0 %26 }
  0x8b   :  { %v39_v35 = vmul.f32 %v1906_v13, %v32_v27  ;;  %v38_v36 = vmul.f32 %v1906_v13, %v27_v28 }
  0x8c   :  { %v89_v30 = vmax.f32 %v87_v26, 0.0 }
  0x8e   :  { %v99_v32 = vpack.c.bf16 %v89_v30, %v88_v29 }
  0x8f   :  { %v42_v33 = vpop.permute.xlu1 %41  ;;  %v46_v34 = vpop.permute.xlu0 %45 }
  0x90   :  { %v52_v37 = vmul.f32 %v1907_v12, %v42_v33  ;;  %v53_v38 = vmul.f32 %v1907_v12, %v46_v34  ;;  %2049 = vmatmul.mubr.msk.bf16.vlgmr.msra.gmra.mrb[0].mxu0 %vm112_vm1, %v99_v32 }
  0x91   :  { %2061 = vmatpush3.bf16.msra.mxu0 %v2268_v31  ;;  %2066 = vmatprep.mubr.msk.bf16.mxu0 %vm2372_vm0, %v2369_v5 }
  0x92   :  { %v54_v40 = vadd.f32 %v52_v37, %v38_v36  ;;  %v55_v41 = vadd.f32 %v53_v38, %v39_v35  ;;  %2062 = vmatprep.subr.bf16.mxu0 %v2369_v5 }
  0x93   :  { %v222_v48 = vpop.permute.xlu1 %221  ;;  %v291_v7 = vpop.permute.xlu0 %290 }
  0x94   :  { %v60_v42 = vadd.f32 %v1908_v19, %v54_v40  ;;  %v61_v43 = vadd.f32 %v1908_v19, %v55_v41 }
  0x95   :  { %2063 = vmatpush3.bf16.msra.mxu0 %v2270_v39 }
  0x96   :  { %v62_v45 = vmax.f32 %v60_v42, 0.0  ;;  %v63_v46 = vmax.f32 %v61_v43, 0.0  ;;  %2064 = vmatprep.subr.bf16.mxu0 %v2369_v5 }
  0x97   :  { %v289_v60 = vpop.permute.xlu1 %288 }
  0x98   :  { %v94_v47 = vpack.c.bf16 %v63_v46, %v62_v45 }
  0x99   :  { %2065 = vmatpush3.bf16.msra.mxu0 %v2272_v44 }
  0x9a   :  { %2057 = vmatmul.mubr.msk.bf16.vlgmr.msra.gmra.mrb[0].mxu1 %vm112_vm1, %v94_v47  ;;  %2076 = vmatprep.subr.bf16.mxu0 %v2369_v5 }
  0x9b   :  { %356 = vmatprep.mubr.bf16.mxu1 %v2370_v6  ;;  %325 = vmatpush1.bf16.msra.mxu1 %v2273_v50 }
  0x9c   :  { %2067 = vmatmul.mubr.msk.bf16.vlgmr.msra.gmra.mrb[4].mxu0 %vm241_vm2, %v222_v48  ;;  %326 = vmatprep.subr.bf16.mxu1 %v2278_v51 }
  0x9d   :  { %2078 = vmatprep.mubr.msk.bf16.mxu0 %vm2372_vm0, %v2369_v5 }
  0x9f   :  { %327 = vmatpush1.bf16.msra.mxu1 %v2276_v52 }
  0xa0   :  { %2070 = vmatprep.subr.bf16.mxu1 %v2369_v5 }
 0x163   :  { %v150_v53 = vpop.f32.mrb[0].mxu0 }
 0x164   :  { %v2050_v54 = vpop.f32.mrb[1].mxu0 }
 0x165   :  { %v153_v55 = vpop.f32.mrb[2].mxu0 }
 0x166   :  { %v2051_v56 = vpop.f32.mrb[3].mxu0 }
 0x16d   :  { %v206_v57 = vpop.f32.mrb[0].mxu1 }
 0x16e   :  { %v207_v58 = vadd.f32 %v206_v57, %v150_v53  ;;  %v2058_v59 = vpop.f32.mrb[1].mxu1 }
 0x16f   :  { %v279_v61 = vpop.f32.mrb[4].mxu0  ;;  %v209_v62 = vpop.f32.mrb[2].mxu1 }
 0x170   :  { %v286_v63 = vadd.f32 %v279_v61, %v207_v58  ;;  %v210_v1 = vadd.f32 %v209_v62, %v153_v55  ;;  %v2068_v2 = vpop.f32.mrb[5].mxu0  ;;  %v2059_v4 = vpop.f32.mrb[3].mxu1 }
 0x171   :  { %v282_v6 = vpop.f32.mrb[6].mxu0 }
 0x172   :  { %v287_v8 = vadd.f32 %v282_v6, %v210_v1  ;;  %v2069_v9 = vpop.f32.mrb[7].mxu0  ;;  %v2493_v10 = vadd.f32 %v289_v60, %v286_v63 }
 0x174   :  { %v2495_v11 = vadd.f32 %v291_v7, %v287_v8 }
 0x176   :  { %v300_v12 = vpack.c.bf16 %v2495_v11, %v2493_v10 }
 0x178   :  { %1923 = vmatmul.mubr.msk.bf16.vlgmr.msra.gmra.mrb[4].mxu1 %vm112_vm1, %v300_v12 }
 0x179   :  { %2072 = vmatprep.mubr.msk.bf16.mxu1 %vm2372_vm0, %v2369_v5 }
 0x24b   :  { %v358_v13 = vpop.f32.mrb[4].mxu1 }
 0x24c   :  { %v2502_v14 = vpack.c.bf16 %v358_v13, %v358_v13  ;;  %v360_v15 = vpop.f32.mrb[5].mxu1 }
 0x24d   :  { %v362_v16 = vpop.f32.mrb[6].mxu1  ;;  %v2515_v23 = vpack.c.bf16 %v360_v15, %v360_v15 }
 0x24e   :  { %v2504_v17 = vpack.c.bf16 %v362_v16, %v362_v16  ;;  %370 = vrot.lane.b32.xlu1 %v2502_v14, %s2375_s21  ;;  %v364_v18 = vpop.f32.mrb[7].mxu1 }
 0x24f   :  { %v2518_v24 = vpack.c.bf16 %v364_v18, %v364_v18 }
 0x250   :  { %422 = vrot.lane.b32.xlu0 %v2504_v17, %s2375_s21 }
 0x252   :  { %372 = vrot.lane.b32.xlu1 %v2410_v0, %s2376_s22  ;;  %v505_v0 = vsel %vm503_vm3, %v2515_v23, 0 }
 0x254   :  { %424 = vrot.lane.b32.xlu0 %v2417_v3, %s2376_s22  ;;  %v551_v3 = vsel %vm503_vm3, %v2518_v24, 0 }
 0x2c0   :  { %v371_v19 = vpop.permute.xlu1 %370 }
 0x2c1   :  { %v379_v20 = vsel %vm112_vm1, %v371_v19, 0 }
 0x2c2   :  { %2071 = vmatpush3.bf16.xpose.msra.mxu1 %v379_v20  ;;  %v423_v21 = vpop.permute.xlu0 %422 }
 0x2c3   :  { %v431_v22 = vsel %vm112_vm1, %v423_v21, 0  ;;  %2082 = vmatprep.subr.bf16.mxu1 %v2369_v5 }
 0x2c4   :  { %2077 = vmatpush3.bf16.xpose.msra.mxu0 %v431_v22  ;;  %v2534_v25 = vpop.permute.xlu1 %372 }
 0x2c5   :  { %2088 = vmatprep.subr.bf16.mxu0 %v2369_v5 }
 0x2c6   :  { %v2536_v27 = vpop.permute.xlu0 %424 }
 0x2c9   :  { %2073 = vmatmul.mubr.msk.bf16.vlgmr.msra.gmra.mrb[8].mxu1 %vm112_vm1, %v2502_v14 }
 0x2ca   :  { %2083 = vmatpush3.bf16.msra.mxu1 %v505_v0  ;;  %2084 = vmatprep.mubr.msk.bf16.mxu1 %vm2372_vm0, %v2369_v5 }
 0x2cb   :  { %2079 = vmatmul.mubr.msk.bf16.vlgmr.msra.gmra.mrb[8].mxu0 %vm112_vm1, %v2504_v17  ;;  %2094 = vmatprep.subr.bf16.mxu1 %v2369_v5 }
 0x2cc   :  { %2089 = vmatpush3.bf16.msra.mxu0 %v551_v3  ;;  %2090 = vmatprep.mubr.msk.bf16.mxu0 %vm2372_vm0, %v2369_v5 }
 0x2cd   :  { %2100 = vmatprep.subr.bf16.mxu0 %v2369_v5 }
 0x39c   :  { %v415_v26 = vpop.f32.mrb[8].mxu1 }
 0x39d   :  { %v416_v28 = vadd.f32 %v415_v26, %v2534_v25  ;;  %v2074_v29 = vpop.f32.mrb[9].mxu1 }
 0x39e   :  { %v467_v30 = vpop.f32.mrb[8].mxu0  ;;  %v418_v31 = vpop.f32.mrb[10].mxu1 }
 0x39f   :  { %v468_v32 = vadd.f32 %v467_v30, %v2536_v27  ;;  %v2075_v33 = vpop.f32.mrb[11].mxu1  ;;  %v2080_v34 = vpop.f32.mrb[9].mxu0  ;;  %v474_v35 = vsel %vm473_vm4, %v416_v28, -inf }
 0x3a0   :  { %v470_v36 = vpop.f32.mrb[10].mxu0  ;;  %475 = vmax.xlane.f32.xlu1 %v474_v35 }
 0x3a1   :  { %v2081_v37 = vpop.f32.mrb[11].mxu0  ;;  %v477_v38 = vsel %vm473_vm4, %v468_v32, -inf }
 0x3a2   :  { %478 = vmax.xlane.f32.xlu0 %v477_v38 }
 0x42d   :  { %v476_v39 = vpop.xlane.xlu1 %475 }
 0x42e   :  { %v480_v40 = vsub.f32 %v416_v28, %v476_v39 }
 0x42f   :  { %v479_v41 = vpop.xlane.xlu0 %478 }
 0x430   :  { %v482_v42 = vmul.f32 1.442695, %v480_v40  ;;  %v481_v43 = vsub.f32 %v468_v32, %v479_v41 }
 0x432   :  { %2299 = vpow2.f32 %v482_v42  ;;  %v484_v44 = vmul.f32 1.442695, %v481_v43 }
 0x434   :  { %2301 = vpow2.f32 %v484_v44  ;;  %v2279_v44 = vld [vmem:[%s2835_s2 + $0x90] ss:$8 sps:$4 sm:$0xff]  }
 0x43c   :  { %v2300_v45 = vpop.eup %2299 }
 0x43d   :  { %v486_v46 = vsel %vm473_vm4, %v2300_v45, 0.0 }
 0x43e   :  { %v2302_v47 = vpop.eup %2301  ;;  %487 = vadd.xlane.f32.xlu0 %v486_v46  ;;  %v2281_v46 = vld [vmem:[%s2835_s2 + $0xb0] ss:$8 sps:$4 sm:$0xff]  }
 0x43f   :  { %v489_v48 = vsel %vm473_vm4, %v2302_v47, 0.0 }
 0x440   :  { %490 = vadd.xlane.f32.xlu1 %v489_v48 }
 0x451   :  { %645 = vrot.lane.b32.xlu1 %v2504_v17, %s2377_s23 }
 0x454   :  { %595 = vrot.lane.b32.xlu0 %v2502_v14, %s2377_s23 }
 0x455   :  { %593 = vrot.lane.b32.xlu1 %v2502_v14, %s2378_s24 }
 0x458   :  { %643 = vrot.lane.b32.xlu0 %v2504_v17, %s2378_s24 }
 0x4cb   :  { %v488_v49 = vpop.xlane.xlu0 %487 }
 0x4cc   :  { %2303 = vrcp.f32 %v488_v49 }
 0x4cd   :  { %v491_v50 = vpop.xlane.xlu1 %490 }
 0x4ce   :  { %2305 = vrcp.f32 %v491_v50 }
 0x4cf   :  { %v596_v54 = vpop.permute.xlu0 %595 }
 0x4d0   :  { %v601_v58 = vsel %vm112_vm1, %v596_v54, 0 }
 0x4d1   :  { %v646_v57 = vpop.permute.xlu1 %645 }
 0x4d2   :  { %v651_v60 = vsel %vm112_vm1, %v646_v57, 0 }
 0x4d3   :  { %v644_v62 = vpop.permute.xlu0 %643 }
 0x4d5   :  { %v594_v61 = vpop.permute.xlu1 %593 }
 0x4d6   :  { %v2304_v51 = vpop.eup %2303 }
 0x4d7   :  { %v493_v52 = vmul.f32 %v2304_v51, %v2300_v45  ;;  %v2280_v45 = vld [vmem:[%s2835_s2 + $0xa0] ss:$8 sps:$4 sm:$0xff]  }
 0x4d8   :  { %v2306_v53 = vpop.eup %2305 }
 0x4d9   :  { %v495_v55 = vmul.f32 %v2306_v53, %v2302_v47  ;;  %v496_v56 = vpack.c.bf16 %v493_v52, %v493_v52  ;;  %v2282_v47 = vld [vmem:[%s2835_s2 + $0xc0] ss:$8 sps:$4 sm:$0xff]  }
 0x4db   :  { %2085 = vmatmul.mubr.msk.bf16.vlgmr.msra.gmra.mrb[12].mxu1 %vm473_vm4, %v496_v56  ;;  %v497_v59 = vpack.c.bf16 %v495_v55, %v495_v55 }
 0x4dc   :  { %2095 = vmatpush3.bf16.xpose.msra.mxu1 %v601_v58  ;;  %2096 = vmatprep.mubr.msk.bf16.mxu1 %vm2372_vm0, %v2369_v5 }
 0x4dd   :  { %2091 = vmatmul.mubr.msk.bf16.vlgmr.msra.gmra.mrb[12].mxu0 %vm473_vm4, %v497_v59  ;;  %2106 = vmatprep.subr.bf16.mxu1 %v2369_v5 }
 0x4de   :  { %2101 = vmatpush3.bf16.xpose.msra.mxu0 %v651_v60  ;;  %2102 = vmatprep.mubr.msk.bf16.mxu0 %vm2372_vm0, %v2369_v5 }
 0x4df   :  { %2112 = vmatprep.subr.bf16.mxu0 %v2369_v5 }
 0x4e3   :  { %2097 = vmatmul.mubr.msk.bf16.vlgmr.msra.gmra.mrb[16].mxu1 %vm112_vm1, %v594_v61 }
 0x4e4   :  { %2108 = vmatprep.mubr.msk.bf16.mxu1 %vm2372_vm0, %v2369_v5 }
 0x4e5   :  { %2103 = vmatmul.mubr.msk.bf16.vlgmr.msra.gmra.mrb[16].mxu0 %vm112_vm1, %v644_v62 }
 0x4e6   :  { %2114 = vmatprep.mubr.msk.bf16.mxu0 %vm2372_vm0, %v2369_v5 }
 0x5ae   :  { %v2568_v63 = vpop.f32.mrb[12].mxu1 }
 0x5af   :  { %v2086_v1 = vpop.f32.mrb[13].mxu1 }
 0x5b0   :  { %v544_v2 = vpop.f32.mrb[14].mxu1  ;;  %v2570_v4 = vpop.f32.mrb[12].mxu0 }
 0x5b1   :  { %v2087_v6 = vpop.f32.mrb[15].mxu1  ;;  %v2092_v7 = vpop.f32.mrb[13].mxu0 }
 0x5b2   :  { %v590_v8 = vpop.f32.mrb[14].mxu0 }
 0x5b3   :  { %v2093_v9 = vpop.f32.mrb[15].mxu0 }
 0x5b6   :  { %v637_v12 = vpop.f32.mrb[16].mxu1 }
 0x5b7   :  { %v638_v13 = vadd.f32 %v637_v12, %v2534_v25  ;;  %v2098_v14 = vpop.f32.mrb[17].mxu1 }
 0x5b8   :  { %v640_v15 = vpop.f32.mrb[18].mxu1  ;;  %v687_v16 = vpop.f32.mrb[16].mxu0 }
 0x5b9   :  { %v688_v17 = vadd.f32 %v687_v16, %v2536_v27  ;;  %v2099_v18 = vpop.f32.mrb[19].mxu1  ;;  %v2104_v19 = vpop.f32.mrb[17].mxu0  ;;  %v693_v20 = vsel %vm473_vm4, %v638_v13, -inf }
 0x5ba   :  { %v690_v21 = vpop.f32.mrb[18].mxu0  ;;  %694 = vmax.xlane.f32.xlu1 %v693_v20  ;;  %v2283_v20 = vld [vmem:[%s2835_s2 + $0xd0] ss:$8 sps:$4 sm:$0xff]  }
 0x5bb   :  { %v2105_v22 = vpop.f32.mrb[19].mxu0  ;;  %v696_v0 = vsel %vm473_vm4, %v688_v17, -inf  ;;  %v2284_v21 = vld [vmem:[%s2835_s2 + $0xe0] ss:$8 sps:$4 sm:$0xff]  }
 0x5bc   :  { %697 = vmax.xlane.f32.xlu0 %v696_v0 }
 0x647   :  { %v695_v3 = vpop.xlane.xlu1 %694 }
 0x648   :  { %v699_v26 = vsub.f32 %v638_v13, %v695_v3 }
 0x649   :  { %v698_v28 = vpop.xlane.xlu0 %697 }
 0x64a   :  { %v701_v29 = vmul.f32 1.442695, %v699_v26  ;;  %v700_v25 = vsub.f32 %v688_v17, %v698_v28 }
 0x64c   :  { %2307 = vpow2.f32 %v701_v29  ;;  %v703_v30 = vmul.f32 1.442695, %v700_v25 }
 0x64e   :  { %2309 = vpow2.f32 %v703_v30 }
 0x656   :  { %v2308_v31 = vpop.eup %2307 }
 0x657   :  { %v705_v27 = vsel %vm473_vm4, %v2308_v31, 0.0 }
 0x658   :  { %v2310_v32 = vpop.eup %2309  ;;  %706 = vadd.xlane.f32.xlu0 %v705_v27 }
 0x659   :  { %v708_v33 = vsel %vm473_vm4, %v2310_v32, 0.0 }
 0x65a   :  { %709 = vadd.xlane.f32.xlu1 %v708_v33 }
 0x66b   :  { %767 = vrot.lane.b32.xlu1 %v2518_v24, %s2378_s24 }
 0x66e   :  { %718 = vrot.lane.b32.xlu0 %v2515_v23, %s2378_s24 }
 0x6e5   :  { %v707_v34 = vpop.xlane.xlu0 %706 }
 0x6e6   :  { %2311 = vrcp.f32 %v707_v34  ;;  %v1938_v34 = vld [vmem:[%s2836_s3 + $0x4] ss:$0 sm:$0xff] }
 0x6e7   :  { %v710_v35 = vpop.xlane.xlu1 %709 }
 0x6e8   :  { %2313 = vrcp.f32 %v710_v35 }
 0x6e9   :  { %v719_v36 = vpop.permute.xlu0 %718 }
 0x6ea   :  { %v724_v37 = vsel %vm503_vm3, %v719_v36, 0 }
 0x6eb   :  { %2107 = vmatpush3.bf16.msra.mxu1 %v724_v37  ;;  %v768_v38 = vpop.permute.xlu1 %767 }
 0x6ec   :  { %v773_v39 = vsel %vm503_vm3, %v768_v38, 0  ;;  %2118 = vmatprep.subr.bf16.mxu1 %v2369_v5  ;;  %v2285_v38 = vld [vmem:[%s2835_s2 + $0xf0] ss:$8 sps:$4 sm:$0xff]  }
 0x6ed   :  { %2113 = vmatpush3.bf16.msra.mxu0 %v773_v39 }
 0x6ee   :  { %2130 = vmatprep.subr.bf16.mxu0 %v2369_v5 }
 0x6f0   :  { %v2312_v24 = vpop.eup %2311 }
 0x6f1   :  { %v712_v40 = vmul.f32 %v2312_v24, %v2308_v31  ;;  %v1937_v31 = vld [vmem:[%s2836_s3 + $0x3] ss:$0 sm:$0xff] }
 0x6f2   :  { %v2314_v41 = vpop.eup %2313  ;;  %v2286_v24 = vld [vmem:[%s2835_s2 + $0x100] ss:$8 sps:$4 sm:$0xff]  }
 0x6f3   :  { %v714_v23 = vmul.f32 %v2314_v41, %v2310_v32  ;;  %v715_v42 = vpack.c.bf16 %v712_v40, %v712_v40  ;;  %v944_v40 = vld [vmem:[%s2834_s1] sm:$0xff]  ;;  %v945_v41 = vld [vmem:[%s2834_s1 + $0x8] sm:$0xff] }
 0x6f5   :  { %2109 = vmatmul.mubr.msk.bf16.vlgmr.msra.gmra.mrb[20].mxu1 %vm473_vm4, %v715_v42  ;;  %v716_v43 = vpack.c.bf16 %v714_v23, %v714_v23  ;;  %v1011_v23 = vpack.c.bf16 %v945_v41, %v944_v40 }
 0x6f6   :  { %2126 = vmatprep.mubr.msk.bf16.mxu1 %vm2372_vm0, %v2369_v5  ;;  %2119 = vmatpush3.bf16.msra.mxu1 %v2279_v44 }
 0x6f7   :  { %2115 = vmatmul.mubr.msk.bf16.vlgmr.msra.gmra.mrb[20].mxu0 %vm473_vm4, %v716_v43  ;;  %2120 = vmatprep.subr.bf16.mxu1 %v2369_v5 }
 0x6f8   :  { %2134 = vmatprep.mubr.msk.bf16.mxu0 %vm2372_vm0, %v2369_v5  ;;  %2131 = vmatpush3.bf16.msra.mxu0 %v2283_v20 }
 0x6f9   :  { %2132 = vmatprep.subr.bf16.mxu0 %v2369_v5 }
 0x6fa   :  { %2121 = vmatpush3.bf16.msra.mxu1 %v2280_v45 }
 0x6fb   :  { %2122 = vmatprep.subr.bf16.mxu1 %v2369_v5 }
 0x6fc   :  { %2133 = vmatpush3.bf16.msra.mxu0 %v2284_v21 }
 0x6fd   :  { %2138 = vmatprep.subr.bf16.mxu0 %v2369_v5 }
 0x6fe   :  { %2123 = vmatpush3.bf16.msra.mxu1 %v2281_v46 }
 0x6ff   :  { %2124 = vmatprep.subr.bf16.mxu1 %v2369_v5 }
 0x702   :  { %2125 = vmatpush3.bf16.msra.mxu1 %v2282_v47 }
 0x703   :  { %2146 = vmatprep.subr.bf16.mxu1 %v2369_v5 }
 0x7c8   :  { %v760_v48 = vpop.f32.mrb[20].mxu1 }
 0x7c9   :  { %v2110_v49 = vpop.f32.mrb[21].mxu1 }
 0x7ca   :  { %v763_v50 = vpop.f32.mrb[22].mxu1  ;;  %v809_v51 = vpop.f32.mrb[20].mxu0 }
 0x7cb   :  { %v2255_v52 = vpack.i.bf16 %v809_v51, %v760_v48  ;;  %v2111_v53 = vpop.f32.mrb[23].mxu1  ;;  %v2116_v54 = vpop.f32.mrb[21].mxu0 }
 0x7cc   :  { %v812_v55 = vpop.f32.mrb[22].mxu0 }
 0x7cd   :  { %v2117_v56 = vpop.f32.mrb[23].mxu0  ;;  %2256 = vrot.lane.b32.xlu1 %v2255_v52, %s2377_s23 }
 0x83f   :  { %v2257_v57 = vpop.permute.xlu1 %2256 }
 0x840   :  { %v2259_v58 = vunpack.i.h.bf16 %v2257_v57  ;;  %v2258_v59 = vunpack.i.l.bf16 %v2257_v57 }
 0x842   :  { %v824_v60 = vsel %vm112_vm1, %v2570_v4, %v2259_v58  ;;  %v823_v61 = vsel %vm112_vm1, %v2568_v63, %v2258_v59 }
 0x843   :  { %v833_v62 = vpack.c.bf16 %v824_v60, %v823_v61 }
 0x845   :  { %2127 = vmatmul.mubr.msk.bf16.vlgmr.msra.gmra.mrb[24].mxu1 %vm858_vm5, %v833_v62 }
 0x846   :  { %2148 = vmatprep.mubr.msk.bf16.mxu1 %vm2372_vm0, %v2369_v5 }
 0x918   :  { %v896_v1 = vpop.f32.mrb[24].mxu1 }
 0x919   :  { %v897_v2 = vadd.f32 %v896_v1, %v2493_v10  ;;  %v2128_v6 = vpop.f32.mrb[25].mxu1 }
 0x91a   :  { %v899_v7 = vpop.f32.mrb[26].mxu1 }
 0x91b   :  { %v900_v8 = vadd.f32 %v899_v7, %v2495_v11  ;;  %v2129_v9 = vpop.f32.mrb[27].mxu1  ;;  %v903_v4 = vsel %vm112_vm1, %v897_v2, 0.0 }
 0x91c   :  { %904 = vadd.xlane.f32.xlu0 %v903_v4 }
 0x91d   :  { %v906_v63 = vsel %vm112_vm1, %v900_v8, 0.0 }
 0x91e   :  { %907 = vadd.xlane.f32.xlu1 %v906_v63 }
 0x9a9   :  { %v905_v12 = vpop.xlane.xlu0 %904 }
 0x9aa   :  { %v910_v13 = vmul.f32 0.03125, %v905_v12 }
 0x9ab   :  { %v908_v14 = vpop.xlane.xlu1 %907 }
 0x9ac   :  { %v912_v15 = vsub.f32 %v897_v2, %v910_v13  ;;  %v911_v16 = vmul.f32 0.03125, %v908_v14 }
 0x9ae   :  { %v913_v17 = vsub.f32 %v900_v8, %v911_v16  ;;  %v914_v18 = vmul.f32 %v912_v15, %v912_v15 }
 0x9b0   :  { %v916_v10 = vsel %vm112_vm1, %v914_v18, 0.0  ;;  %v915_v19 = vmul.f32 %v913_v17, %v913_v17 }
 0x9b1   :  { %917 = vadd.xlane.f32.xlu0 %v916_v10 }
 0x9b2   :  { %v919_v11 = vsel %vm112_vm1, %v915_v19, 0.0 }
 0x9b5   :  { %920 = vadd.xlane.f32.xlu0 %v919_v11 }
 0xa3e   :  { %v918_v22 = vpop.xlane.xlu0 %917 }
 0xa3f   :  { %v922_v0 = vmul.f32 0.03125, %v918_v22 }
 0xa41   :  { %v924_v3 = vadd.f32 1e-06, %v922_v0 }
 0xa42   :  { %v921_v26 = vpop.xlane.xlu0 %920 }
 0xa43   :  { %2315 = vrsqrt.f32 %v924_v3  ;;  %v923_v28 = vmul.f32 0.03125, %v921_v26 }
 0xa45   :  { %v925_v29 = vadd.f32 1e-06, %v923_v28 }
 0xa47   :  { %2317 = vrsqrt.f32 %v925_v29 }
 0xa4d   :  { %v2316_v25 = vpop.eup %2315 }
 0xa4e   :  { %v928_v30 = vmul.f32 %v2316_v25, %v912_v15 }
 0xa50   :  { %v935_v32 = vmul.f32 %v1937_v31, %v928_v30 }
 0xa51   :  { %v2318_v27 = vpop.eup %2317 }
 0xa52   :  { %v929_v33 = vmul.f32 %v2318_v27, %v913_v17  ;;  %v2636_v36 = vadd.f32 %v1938_v34, %v935_v32 }
 0xa54   :  { %v936_v35 = vmul.f32 %v1937_v31, %v929_v33 }
 0xa56   :  { %v2638_v37 = vadd.f32 %v1938_v34, %v936_v35 }
 0xa58   :  { %v950_v39 = vpack.c.bf16 %v2638_v37, %v2636_v36 }
 0xa5a   :  { %2135 = vmatmul.mubr.msk.bf16.vlgmr.msra.gmra.mrb[24].mxu0 %vm112_vm1, %v950_v39 }
 0xa5b   :  { %2139 = vmatpush3.bf16.msra.mxu0 %v2285_v38  ;;  %2142 = vmatprep.mubr.msk.bf16.mxu0 %vm2372_vm0, %v2369_v5 }
 0xa5c   :  { %2140 = vmatprep.subr.bf16.mxu0 %v2369_v5 }
 0xa5f   :  { %2141 = vmatpush3.bf16.msra.mxu0 %v2286_v24 }
 0xa60   :  { %2152 = vmatprep.subr.bf16.mxu0 %v2369_v5 }
 0xa62   :  { %2143 = vmatmul.mubr.msk.bf16.vlgmr.msra.gmra.mrb[28].mxu0 %vm112_vm1, %v1011_v23 }
 0xa63   :  { %2154 = vmatprep.mubr.msk.bf16.mxu0 %vm2372_vm0, %v2369_v5 }
 0xb2d   :  { %v1000_v42 = vpop.f32.mrb[24].mxu0 }
 0xb2e   :  { %v2136_v43 = vpop.f32.mrb[25].mxu0  ;;  %v1068_v54 = vpack.c.bf16 %v1000_v42, %v1000_v42 }
 0xb2f   :  { %v1003_v44 = vpop.f32.mrb[26].mxu0 }
 0xb30   :  { %v2137_v45 = vpop.f32.mrb[27].mxu0  ;;  %v1069_v55 = vpack.c.bf16 %v1003_v44, %v1003_v44 }
 0xb35   :  { %v1061_v46 = vpop.f32.mrb[28].mxu0 }
 0xb36   :  { %v2662_v47 = vpack.c.bf16 %v1061_v46, %v1061_v46  ;;  %v2144_v48 = vpop.f32.mrb[29].mxu0 }
 0xb37   :  { %v1064_v49 = vpop.f32.mrb[30].mxu0 }
 0xb38   :  { %v2664_v50 = vpack.c.bf16 %v1064_v49, %v1064_v49  ;;  %v2145_v51 = vpop.f32.mrb[31].mxu0  ;;  %v1076_v52 = vsel %vm112_vm1, %v2662_v47, 0 }
 0xb39   :  { %2147 = vmatpush3.bf16.xpose.msra.mxu1 %v1076_v52 }
 0xb3a   :  { %v1122_v53 = vsel %vm112_vm1, %v2664_v50, 0  ;;  %2158 = vmatprep.subr.bf16.mxu1 %v2369_v5 }
 0xb3b   :  { %2153 = vmatpush3.bf16.xpose.msra.mxu0 %v1122_v53 }
 0xb3c   :  { %2164 = vmatprep.subr.bf16.mxu0 %v2369_v5 }
 0xb40   :  { %2149 = vmatmul.mubr.msk.bf16.vlgmr.msra.gmra.mrb[28].mxu1 %vm112_vm1, %v1068_v54 }
 0xb41   :  { %2160 = vmatprep.mubr.msk.bf16.mxu1 %vm2372_vm0, %v2369_v5 }
 0xb42   :  { %2155 = vmatmul.mubr.msk.bf16.vlgmr.msra.gmra.mrb[32].mxu0 %vm112_vm1, %v1069_v55 }
 0xb43   :  { %2166 = vmatprep.mubr.msk.bf16.mxu0 %vm2372_vm0, %v2369_v5 }
 0xc13   :  { %v1112_v56 = vpop.f32.mrb[28].mxu1 }
 0xc14   :  { %v2150_v57 = vpop.f32.mrb[29].mxu1  ;;  %v1164_v58 = vsel %vm473_vm4, %v1112_v56, -inf }
 0xc15   :  { %v1158_v59 = vpop.f32.mrb[32].mxu0  ;;  %1165 = vmax.xlane.f32.xlu1 %v1164_v58  ;;  %v1115_v60 = vpop.f32.mrb[30].mxu1 }
 0xc16   :  { %v2151_v61 = vpop.f32.mrb[31].mxu1  ;;  %v2156_v62 = vpop.f32.mrb[33].mxu0  ;;  %v1167_v1 = vsel %vm473_vm4, %v1158_v59, -inf }
 0xc17   :  { %1168 = vmax.xlane.f32.xlu0 %v1167_v1  ;;  %v1161_v2 = vpop.f32.mrb[34].mxu0 }
 0xc18   :  { %v2157_v6 = vpop.f32.mrb[35].mxu0 }
 0xc26   :  { %1189 = vrot.lane.b32.xlu1 %v2662_v47, %s2375_s21 }
 0xca2   :  { %v1166_v7 = vpop.xlane.xlu1 %1165 }
 0xca3   :  { %v1170_v8 = vsub.f32 %v1112_v56, %v1166_v7 }
 0xca4   :  { %v1169_v9 = vpop.xlane.xlu0 %1168 }
 0xca5   :  { %v1172_v4 = vmul.f32 1.442695, %v1170_v8  ;;  %v1171_v63 = vsub.f32 %v1158_v59, %v1169_v9 }
 0xca6   :  { %v1190_v12 = vpop.permute.xlu1 %1189 }
 0xca7   :  { %2319 = vpow2.f32 %v1172_v4  ;;  %v1174_v13 = vmul.f32 1.442695, %v1171_v63  ;;  %v1195_v14 = vsel %vm503_vm3, %v1190_v12, 0 }
 0xca8   :  { %2159 = vmatpush3.bf16.msra.mxu1 %v1195_v14  ;;  %v2287_v14 = vld [vmem:[%s2835_s2 + $0x110] ss:$8 sps:$4 sm:$0xff]  }
 0xca9   :  { %2321 = vpow2.f32 %v1174_v13  ;;  %2170 = vmatprep.subr.bf16.mxu1 %v2369_v5 }
 0xcb1   :  { %v2320_v15 = vpop.eup %2319 }
 0xcb2   :  { %v1176_v16 = vsel %vm473_vm4, %v2320_v15, 0.0 }
 0xcb3   :  { %v2322_v17 = vpop.eup %2321  ;;  %1177 = vadd.xlane.f32.xlu1 %v1176_v16  ;;  %v2289_v16 = vld [vmem:[%s2835_s2 + $0x130] ss:$8 sps:$4 sm:$0xff]  }
 0xcb4   :  { %v1179_v18 = vsel %vm473_vm4, %v2322_v17, 0.0 }
 0xcb5   :  { %1180 = vadd.xlane.f32.xlu0 %v1179_v18 }
 0xcc4   :  { %1289 = vrot.lane.b32.xlu1 %v2662_v47, %s2378_s24 }
 0xcc8   :  { %1340 = vrot.lane.b32.xlu1 %v2664_v50, %s2378_s24 }
 0xccb   :  { %1238 = vrot.lane.b32.xlu0 %v2664_v50, %s2375_s21 }
 0xccc   :  { %1338 = vrot.lane.b32.xlu1 %v1069_v55, %s2378_s24 }
 0xccf   :  { %1287 = vrot.lane.b32.xlu0 %v1068_v54, %s2378_s24 }
 0xd40   :  { %v1178_v10 = vpop.xlane.xlu1 %1177 }
 0xd41   :  { %2323 = vrcp.f32 %v1178_v10 }
 0xd42   :  { %v1181_v19 = vpop.xlane.xlu0 %1180 }
 0xd43   :  { %2325 = vrcp.f32 %v1181_v19 }
 0xd44   :  { %v1290_v21 = vpop.permute.xlu1 %1289 }
 0xd45   :  { %v1295_v25 = vsel %vm112_vm1, %v1290_v21, 0 }
 0xd46   :  { %v1239_v11 = vpop.permute.xlu0 %1238 }
 0xd47   :  { %v1244_v20 = vsel %vm503_vm3, %v1239_v11, 0 }
 0xd48   :  { %2165 = vmatpush3.bf16.msra.mxu0 %v1244_v20  ;;  %v1341_v29 = vpop.permute.xlu1 %1340 }
 0xd49   :  { %2176 = vmatprep.subr.bf16.mxu0 %v2369_v5  ;;  %v1346_v31 = vsel %vm112_vm1, %v1341_v29, 0 }
 0xd4a   :  { %v1288_v27 = vpop.permute.xlu0 %1287 }
 0xd4b   :  { %v2324_v22 = vpop.eup %2323 }
 0xd4c   :  { %v1183_v0 = vmul.f32 %v2324_v22, %v2320_v15  ;;  %v1339_v32 = vpop.permute.xlu1 %1338  ;;  %v2288_v15 = vld [vmem:[%s2835_s2 + $0x120] ss:$8 sps:$4 sm:$0xff]  }
 0xd4d   :  { %v2326_v3 = vpop.eup %2325 }
 0xd4e   :  { %v1185_v26 = vmul.f32 %v2326_v3, %v2322_v17  ;;  %v1186_v28 = vpack.c.bf16 %v1183_v0, %v1183_v0  ;;  %v2290_v17 = vld [vmem:[%s2835_s2 + $0x140] ss:$8 sps:$4 sm:$0xff]  }
 0xd50   :  { %2161 = vmatmul.mubr.msk.bf16.vlgmr.msra.gmra.mrb[32].mxu1 %vm473_vm4, %v1186_v28  ;;  %v1187_v30 = vpack.c.bf16 %v1185_v26, %v1185_v26 }
 0xd51   :  { %2171 = vmatpush3.bf16.xpose.msra.mxu1 %v1295_v25  ;;  %2172 = vmatprep.mubr.msk.bf16.mxu1 %vm2372_vm0, %v2369_v5 }
 0xd52   :  { %2167 = vmatmul.mubr.msk.bf16.vlgmr.msra.gmra.mrb[36].mxu0 %vm473_vm4, %v1187_v30  ;;  %2182 = vmatprep.subr.bf16.mxu1 %v2369_v5 }
 0xd53   :  { %2177 = vmatpush3.bf16.xpose.msra.mxu0 %v1346_v31  ;;  %2178 = vmatprep.mubr.msk.bf16.mxu0 %vm2372_vm0, %v2369_v5 }
 0xd54   :  { %2188 = vmatprep.subr.bf16.mxu0 %v2369_v5 }
 0xd58   :  { %2173 = vmatmul.mubr.msk.bf16.vlgmr.msra.gmra.mrb[36].mxu1 %vm112_vm1, %v1288_v27 }
 0xd59   :  { %2184 = vmatprep.mubr.msk.bf16.mxu1 %vm2372_vm0, %v2369_v5 }
 0xd5a   :  { %2179 = vmatmul.mubr.msk.bf16.vlgmr.msra.gmra.mrb[40].mxu0 %vm112_vm1, %v1339_v32 }
 0xd5b   :  { %2190 = vmatprep.mubr.msk.bf16.mxu0 %vm2372_vm0, %v2369_v5 }
 0xe23   :  { %v2712_v33 = vpop.f32.mrb[32].mxu1 }
 0xe24   :  { %v2162_v34 = vpop.f32.mrb[33].mxu1 }
 0xe25   :  { %v1234_v35 = vpop.f32.mrb[34].mxu1  ;;  %v2714_v38 = vpop.f32.mrb[36].mxu0 }
 0xe26   :  { %v2163_v39 = vpop.f32.mrb[35].mxu1  ;;  %v2168_v24 = vpop.f32.mrb[37].mxu0 }
 0xe27   :  { %v1283_v40 = vpop.f32.mrb[38].mxu0 }
 0xe28   :  { %v2169_v41 = vpop.f32.mrb[39].mxu0 }
 0xe2b   :  { %v1331_v23 = vpop.f32.mrb[36].mxu1 }
 0xe2c   :  { %v2174_v42 = vpop.f32.mrb[37].mxu1  ;;  %v1388_v43 = vsel %vm473_vm4, %v1331_v23, -inf }
 0xe2d   :  { %v1382_v44 = vpop.f32.mrb[40].mxu0  ;;  %1389 = vmax.xlane.f32.xlu0 %v1388_v43  ;;  %v1334_v45 = vpop.f32.mrb[38].mxu1 }
 0xe2e   :  { %v2175_v46 = vpop.f32.mrb[39].mxu1  ;;  %v2180_v48 = vpop.f32.mrb[41].mxu0  ;;  %v1391_v49 = vsel %vm473_vm4, %v1382_v44, -inf }
 0xe2f   :  { %1392 = vmax.xlane.f32.xlu1 %v1391_v49  ;;  %v1385_v51 = vpop.f32.mrb[42].mxu0  ;;  %v2291_v48 = vld [vmem:[%s2835_s2 + $0x150] ss:$8 sps:$4 sm:$0xff]   ;;  %v2292_v49 = vld [vmem:[%s2835_s2 + $0x160] ss:$8 sps:$4 sm:$0xff]  }
 0xe30   :  { %v2181_v52 = vpop.f32.mrb[43].mxu0 }
 0xe40   :  { %1412 = vrot.lane.b32.xlu1 %v2662_v47, %s2377_s23 }
 0xeba   :  { %v1390_v53 = vpop.xlane.xlu0 %1389 }
 0xebb   :  { %v1394_v54 = vsub.f32 %v1331_v23, %v1390_v53 }
 0xebc   :  { %v1393_v55 = vpop.xlane.xlu1 %1392 }
 0xebd   :  { %v1396_v56 = vmul.f32 1.442695, %v1394_v54  ;;  %v1395_v57 = vsub.f32 %v1382_v44, %v1393_v55 }
 0xebf   :  { %2327 = vpow2.f32 %v1396_v56  ;;  %v1398_v58 = vmul.f32 1.442695, %v1395_v57 }
 0xec0   :  { %v1413_v59 = vpop.permute.xlu1 %1412 }
 0xec1   :  { %2329 = vpow2.f32 %v1398_v58  ;;  %v1418_v60 = vsel %vm503_vm3, %v1413_v59, 0  ;;  %v1958_v58 = vld [vmem:[%s2836_s3 + $0x5] ss:$0 sm:$0xff] }
 0xec2   :  { %2183 = vmatpush3.bf16.msra.mxu1 %v1418_v60 }
 0xec3   :  { %2194 = vmatprep.subr.bf16.mxu1 %v2369_v5 }
 0xec9   :  { %v2328_v61 = vpop.eup %2327 }
 0xeca   :  { %v1400_v62 = vsel %vm473_vm4, %v2328_v61, 0.0 }
 0xecb   :  { %v2330_v1 = vpop.eup %2329  ;;  %1401 = vadd.xlane.f32.xlu0 %v1400_v62 }
 0xecc   :  { %v1403_v47 = vsel %vm473_vm4, %v2330_v1, 0.0 }
 0xecf   :  { %1404 = vadd.xlane.f32.xlu0 %v1403_v47 }
 0xee5   :  { %1460 = vrot.lane.b32.xlu0 %v2664_v50, %s2377_s23 }
 0xf58   :  { %v1402_v2 = vpop.xlane.xlu0 %1401 }
 0xf59   :  { %2331 = vrcp.f32 %v1402_v2 }
 0xf5c   :  { %v1405_v6 = vpop.xlane.xlu0 %1404 }
 0xf5d   :  { %2333 = vrcp.f32 %v1405_v6 }
 0xf60   :  { %v1461_v7 = vpop.permute.xlu0 %1460 }
 0xf61   :  { %v1466_v8 = vsel %vm503_vm3, %v1461_v7, 0  ;;  %v2293_v7 = vld [vmem:[%s2835_s2 + $0x170] ss:$8 sps:$4 sm:$0xff]  }
 0xf62   :  { %2189 = vmatpush3.bf16.msra.mxu0 %v1466_v8 }
 0xf63   :  { %v2332_v9 = vpop.eup %2331  ;;  %2206 = vmatprep.subr.bf16.mxu0 %v2369_v5 }
 0xf64   :  { %v1407_v4 = vmul.f32 %v2332_v9, %v2328_v61  ;;  %v2294_v9 = vld [vmem:[%s2835_s2 + $0x180] ss:$8 sps:$4 sm:$0xff]  }
 0xf66   :  { %v1410_v63 = vpack.c.bf16 %v1407_v4, %v1407_v4  ;;  %v2295_v4 = vld [vmem:[%s2835_s2 + $0x190] ss:$8 sps:$4 sm:$0xff]  }
 0xf67   :  { %v2334_v12 = vpop.eup %2333 }
 0xf68   :  { %v1409_v13 = vmul.f32 %v2334_v12, %v2330_v1  ;;  %2185 = vmatmul.mubr.msk.bf16.vlgmr.msra.gmra.mrb[40].mxu1 %vm473_vm4, %v1410_v63  ;;  %v1959_v1 = vld [vmem:[%s2836_s3 + $0x6] ss:$0 sm:$0xff]  ;;  %v2296_v63 = vld [vmem:[%s2835_s2 + $0x1a0] ss:$8 sps:$4 sm:$0xff]  }
 0xf69   :  { %2202 = vmatprep.mubr.msk.bf16.mxu1 %vm2372_vm0, %v2369_v5  ;;  %2195 = vmatpush3.bf16.msra.mxu1 %v2287_v14  ;;  %v1960_v12 = vld [vmem:[%s2836_s3 + $0x9] ss:$0 sm:$0xff] }
 0xf6a   :  { %v1411_v50 = vpack.c.bf16 %v1409_v13, %v1409_v13  ;;  %2196 = vmatprep.subr.bf16.mxu1 %v2369_v5 }
 0xf6c   :  { %2191 = vmatmul.mubr.msk.bf16.vlgmr.msra.gmra.mrb[44].mxu0 %vm473_vm4, %v1411_v50 }
 0xf6d   :  { %2210 = vmatprep.mubr.msk.bf16.mxu0 %vm2372_vm0, %v2369_v5  ;;  %2197 = vmatpush3.bf16.msra.mxu1 %v2288_v15 }
 0xf6e   :  { %2198 = vmatprep.subr.bf16.mxu1 %v2369_v5  ;;  %2207 = vmatpush3.bf16.msra.mxu0 %v2291_v48  ;;  %v1970_v48 = vld [vmem:[%s2836_s3 + $0x7] ss:$0 sm:$0xff] }
 0xf6f   :  { %2208 = vmatprep.subr.bf16.mxu0 %v2369_v5 }
 0xf71   :  { %2199 = vmatpush3.bf16.msra.mxu1 %v2289_v16 }
 0xf72   :  { %2200 = vmatprep.subr.bf16.mxu1 %v2369_v5  ;;  %2209 = vmatpush3.bf16.msra.mxu0 %v2292_v49 }
 0xf73   :  { %2214 = vmatprep.subr.bf16.mxu0 %v2369_v5 }
 0xf75   :  { %2201 = vmatpush3.bf16.msra.mxu1 %v2290_v17 }
 0xf76   :  { %2226 = vmatprep.subr.bf16.mxu1 %v2369_v5 }
0x103b   :  { %v1454_v18 = vpop.f32.mrb[40].mxu1 }
0x103c   :  { %v2186_v10 = vpop.f32.mrb[41].mxu1 }
0x103d   :  { %v1457_v19 = vpop.f32.mrb[42].mxu1 }
0x103e   :  { %v2187_v11 = vpop.f32.mrb[43].mxu1 }
0x103f   :  { %v1502_v20 = vpop.f32.mrb[44].mxu0  ;;  %v1964_v11 = vld [vmem:[%s2836_s3 + $0xa] ss:$0 sm:$0xff] }
0x1040   :  { %v2260_v21 = vpack.i.bf16 %v1502_v20, %v1454_v18  ;;  %v2192_v22 = vpop.f32.mrb[45].mxu0 }
0x1041   :  { %v1505_v0 = vpop.f32.mrb[46].mxu0 }
0x1042   :  { %v2193_v3 = vpop.f32.mrb[47].mxu0  ;;  %2261 = vrot.lane.b32.xlu1 %v2260_v21, %s2377_s23  ;;  %s1895_s23 = sshll.u32 %s2379_s29, 4  ;;  %s1896_s23 = int_to_ptr.vmem [resolvable:$true] %s1895_s23 }
0x1043   :  { %s2343_s30 = scalar_lea.vmem %s1896_s23, 256  ;;  %p2348_p1 = scmp.lt.s32.totalorder %s1896_s23, %s1896_s23 }
0x1044   :  { %p2344_p0 = scmp.ne.s32.totalorder %s1896_s23, %s2343_s30  ;;  %p2349_p2 = scmp.lt.s32.totalorder %s2343_s30, %s2343_s30 }
0x1046   :  { %p2350_p3 = por %p2349_p2, %p2348_p1 }
0x1048   :  { %p2351_p4 = pnand %p2350_p3, %p2344_p0 }
0x10b4   :  { %v2262_v26 = vpop.permute.xlu1 %2261 }
0x10b5   :  { %v2264_v28 = vunpack.i.h.bf16 %v2262_v26  ;;  %v2263_v29 = vunpack.i.l.bf16 %v2262_v26 }
0x10b7   :  { %v1517_v25 = vsel %vm112_vm1, %v2714_v38, %v2264_v28  ;;  %v1516_v30 = vsel %vm112_vm1, %v2712_v33, %v2263_v29 }
0x10b8   :  { %v1526_v31 = vpack.c.bf16 %v1517_v25, %v1516_v30 }
0x10ba   :  { %2203 = vmatmul.mubr.msk.bf16.vlgmr.msra.gmra.mrb[44].mxu1 %vm858_vm5, %v1526_v31 }
0x10bb   :  { %2230 = vmatprep.mubr.msk.bf16.mxu1 %vm2372_vm0, %v2369_v5 }
0x118d   :  { %v1588_v27 = vpop.f32.mrb[44].mxu1 }
0x118e   :  { %v1589_v32 = vadd.f32 %v1588_v27, %v2636_v36  ;;  %v2204_v34 = vpop.f32.mrb[45].mxu1 }
0x118f   :  { %v1591_v35 = vpop.f32.mrb[46].mxu1 }
0x1190   :  { %v1592_v39 = vadd.f32 %v1591_v35, %v2638_v37  ;;  %v2205_v24 = vpop.f32.mrb[47].mxu1  ;;  %v1595_v40 = vsel %vm112_vm1, %v1589_v32, 0.0 }
0x1191   :  { %1596 = vadd.xlane.f32.xlu1 %v1595_v40 }
0x1192   :  { %v1598_v38 = vsel %vm112_vm1, %v1592_v39, 0.0 }
0x1193   :  { %1599 = vadd.xlane.f32.xlu0 %v1598_v38 }
0x121e   :  { %v1597_v33 = vpop.xlane.xlu1 %1596 }
0x121f   :  { %v1601_v41 = vmul.f32 0.03125, %v1597_v33 }
0x1220   :  { %v1600_v23 = vpop.xlane.xlu0 %1599 }
0x1221   :  { %v1603_v42 = vsub.f32 %v1589_v32, %v1601_v41  ;;  %v1602_v43 = vmul.f32 0.03125, %v1600_v23  ;;  %v2297_v41 = vld [vmem:[%s2835_s2 + $0x1b0] ss:$8 sps:$4 sm:$0xff]   ;;  %v2298_v23 = vld [vmem:[%s2835_s2 + $0x1c0] ss:$8 sps:$4 sm:$0xff]  }
0x1222   :  { %2227 = vmatpush3.bf16.msra.mxu1 %v2297_v41 }
0x1223   :  { %v1604_v44 = vsub.f32 %v1592_v39, %v1602_v43  ;;  %v1605_v45 = vmul.f32 %v1603_v42, %v1603_v42  ;;  %2228 = vmatprep.subr.bf16.mxu1 %v2369_v5 }
0x1225   :  { %v1607_v36 = vsel %vm112_vm1, %v1605_v45, 0.0  ;;  %v1606_v46 = vmul.f32 %v1604_v44, %v1604_v44 }
0x1226   :  { %1608 = vadd.xlane.f32.xlu0 %v1607_v36  ;;  %2229 = vmatpush3.bf16.msra.mxu1 %v2298_v23 }
0x1227   :  { %v1610_v37 = vsel %vm112_vm1, %v1606_v46, 0.0 }
0x1228   :  { %1611 = vadd.xlane.f32.xlu1 %v1610_v37 }
0x12b3   :  { %v1609_v51 = vpop.xlane.xlu0 %1608 }
0x12b4   :  { %v1613_v52 = vmul.f32 0.03125, %v1609_v51 }
0x12b5   :  { %v1612_v53 = vpop.xlane.xlu1 %1611 }
0x12b6   :  { %v1615_v54 = vadd.f32 1e-06, %v1613_v52  ;;  %v1614_v55 = vmul.f32 0.03125, %v1612_v53 }
0x12b8   :  { %2335 = vrsqrt.f32 %v1615_v54  ;;  %v1616_v56 = vadd.f32 1e-06, %v1614_v55 }
0x12ba   :  { %2337 = vrsqrt.f32 %v1616_v56 }
0x12c2   :  { %v2336_v57 = vpop.eup %2335 }
0x12c3   :  { %v1619_v59 = vmul.f32 %v2336_v57, %v1603_v42 }
0x12c4   :  { %v2338_v60 = vpop.eup %2337 }
0x12c5   :  { %v1626_v61 = vmul.f32 %v1958_v58, %v1619_v59  ;;  %v1620_v62 = vmul.f32 %v2338_v60, %v1604_v44 }
0x12c7   :  { %v1627_v47 = vmul.f32 %v1958_v58, %v1620_v62  ;;  %v1633_v2 = vadd.f32 %v1959_v1, %v1626_v61 }
0x12c9   :  { %v1634_v6 = vadd.f32 %v1959_v1, %v1627_v47 }
0x12cb   :  { %v1639_v8 = vpack.c.bf16 %v1634_v6, %v1633_v2 }
0x12cd   :  { %2211 = vmatmul.mubr.msk.bf16.vlgmr.msra.gmra.mrb[48].mxu0 %vm112_vm1, %v1639_v8 }
0x12ce   :  { %2215 = vmatpush3.bf16.msra.mxu0 %v2293_v7  ;;  %2222 = vmatprep.mubr.msk.bf16.mxu0 %vm2372_vm0, %v2369_v5 }
0x12cf   :  { %2216 = vmatprep.subr.bf16.mxu0 %v2369_v5 }
0x12d2   :  { %2217 = vmatpush3.bf16.msra.mxu0 %v2294_v9 }
0x12d3   :  { %2218 = vmatprep.subr.bf16.mxu0 %v2369_v5 }
0x12d6   :  { %2219 = vmatpush3.bf16.msra.mxu0 %v2295_v4 }
0x12d7   :  { %2220 = vmatprep.subr.bf16.mxu0 %v2369_v5  ;;  %v1971_v5 = vld [vmem:[%s2836_s3 + $0x8] ss:$0 sm:$0xff] }
0x12da   :  { %2221 = vmatpush3.bf16.msra.mxu0 %v2296_v63 }
0x13a0   :  { %v1694_v13 = vpop.f32.mrb[48].mxu0 }
0x13a1   :  { %v1695_v50 = vadd.f32 %v1960_v12, %v1694_v13  ;;  %v2212_v14 = vpop.f32.mrb[49].mxu0 }
0x13a2   :  { %v1697_v15 = vpop.f32.mrb[50].mxu0 }
0x13a3   :  { %v1698_v16 = vadd.f32 %v1960_v12, %v1697_v15  ;;  %v2213_v17 = vpop.f32.mrb[51].mxu0  ;;  %v1701_v18 = vmax.f32 %v1695_v50, 0.0 }
0x13a5   :  { %v1702_v10 = vmax.f32 %v1698_v16, 0.0 }
0x13a7   :  { %v1711_v19 = vpack.c.bf16 %v1702_v10, %v1701_v18 }
0x13a9   :  { %2223 = vmatmul.mubr.msk.bf16.vlgmr.msra.gmra.mrb[52].mxu0 %vm858_vm5, %v1711_v19 }
0x147c   :  { %v1778_v20 = vpop.f32.mrb[52].mxu0 }
0x147d   :  { %v1779_v21 = vadd.f32 %v1964_v11, %v1778_v20  ;;  %v2224_v22 = vpop.f32.mrb[53].mxu0 }
0x147e   :  { %v1781_v0 = vpop.f32.mrb[54].mxu0 }
0x147f   :  { %v1782_v3 = vadd.f32 %v1964_v11, %v1781_v0  ;;  %v2225_v26 = vpop.f32.mrb[55].mxu0  ;;  %v1785_v28 = vadd.f32 %v1779_v21, %v1633_v2 }
0x1481   :  { %v1787_v29 = vsel %vm112_vm1, %v1785_v28, 0.0  ;;  %v1786_v25 = vadd.f32 %v1782_v3, %v1634_v6 }
0x1482   :  { %1788 = vadd.xlane.f32.xlu0 %v1787_v29 }
0x1483   :  { %v1790_v30 = vsel %vm112_vm1, %v1786_v25, 0.0 }
0x1484   :  { %1791 = vadd.xlane.f32.xlu1 %v1790_v30 }
0x150f   :  { %v1789_v31 = vpop.xlane.xlu0 %1788 }
0x1510   :  { %v1793_v27 = vmul.f32 0.03125, %v1789_v31 }
0x1511   :  { %v1792_v32 = vpop.xlane.xlu1 %1791 }
0x1512   :  { %v1795_v34 = vsub.f32 %v1785_v28, %v1793_v27  ;;  %v1794_v35 = vmul.f32 0.03125, %v1792_v32 }
0x1514   :  { %v1796_v39 = vsub.f32 %v1786_v25, %v1794_v35  ;;  %v1797_v24 = vmul.f32 %v1795_v34, %v1795_v34 }
0x1516   :  { %v1799_v40 = vsel %vm112_vm1, %v1797_v24, 0.0  ;;  %v1798_v38 = vmul.f32 %v1796_v39, %v1796_v39 }
0x1517   :  { %1800 = vadd.xlane.f32.xlu0 %v1799_v40 }
0x1518   :  { %v1802_v33 = vsel %vm112_vm1, %v1798_v38, 0.0 }
0x1519   :  { %1803 = vadd.xlane.f32.xlu1 %v1802_v33 }
0x15a4   :  { %v1801_v42 = vpop.xlane.xlu0 %1800 }
0x15a5   :  { %v1805_v43 = vmul.f32 0.03125, %v1801_v42 }
0x15a6   :  { %v1804_v44 = vpop.xlane.xlu1 %1803 }
0x15a7   :  { %v1807_v45 = vadd.f32 1e-06, %v1805_v43  ;;  %v1806_v36 = vmul.f32 0.03125, %v1804_v44 }
0x15a9   :  { %2339 = vrsqrt.f32 %v1807_v45  ;;  %v1808_v46 = vadd.f32 1e-06, %v1806_v36 }
0x15ab   :  { %2341 = vrsqrt.f32 %v1808_v46 }
0x15b3   :  { %v2340_v37 = vpop.eup %2339 }
0x15b4   :  { %v1811_v49 = vmul.f32 %v2340_v37, %v1795_v34 }
0x15b5   :  { %v2342_v51 = vpop.eup %2341 }
0x15b6   :  { %v1818_v52 = vmul.f32 %v1970_v48, %v1811_v49  ;;  %v1812_v53 = vmul.f32 %v2342_v51, %v1796_v39 }
0x15b8   :  { %v1819_v54 = vmul.f32 %v1970_v48, %v1812_v53  ;;  %v1825_v55 = vadd.f32 %v1971_v5, %v1818_v52 }
0x15ba   :  { %v1826_v56 = vadd.f32 %v1971_v5, %v1819_v54 }
0x15bc   :  { %v1831_v57 = vpack.c.bf16 %v1826_v56, %v1825_v55 }
0x15be   :  { %2231 = vmatmul.mubr.msk.bf16.vlgmr.msra.gmra.mrb[48].mxu1 %vm112_vm1, %v1831_v57 }
0x1691   :  { %v1881_v58 = vpop.f32.mrb[48].mxu1 }
0x1692   :  { %1888 = vst [vmem:[#allocation2] sm:$0xff] %v1881_v58  ;;  %v2232_v59 = vpop.f32.mrb[49].mxu1 }
0x1693   :  { %v1884_v60 = vpop.f32.mrb[50].mxu1 }
0x1694   :  { %1889 = vst [vmem:[#allocation2 + $0x8] sm:$0xff] %v1884_v60  ;;  %v2233_v61 = vpop.f32.mrb[51].mxu1 }
0x1695   :  { %2354 = shalt.err (!%p2351_p4)
}
0x1696   :  { %s2355_s6 = scalar_lea.hbm %s2837_s4, 256 }
0x1697   :  { %p2356_p5 = scmp.ne.s32.totalorder %s2837_s4, %s2355_s6  ;;  %p2359_p6 = scmp.lt.u32.totalorder %s2355_s6, %s2837_s4 }
0x1699   :  { %p2361_p7 = pnand %p2359_p6, %p2356_p5 }
0x169b   :  { %2364 = shalt.err (!%p2361_p7)
}
0x169c   :  { %s2380_s11 = smov 128   ;;  %s2381_s12 = smov 8  }
0x169d   :  { %1901 = dma.vmem_to_hbm [thread:$0]  %s1896_s23, 256, %s2837_s4, [#allocation3], %s2380_s11, %s2380_s11, %s2381_s12  }
0x169e   :  { %2365 = dma.done.wait [#allocation3], 256  }
0x169f   :  { %2366 = vsyncadd [#allocation3], 4294967040 }
0x16a0   :  { %1905 = vsyncpa [#allocation3], 1 }

</bundles_post_ra>
